<compile_context>
chip_gen: v6e
topology: v6e:2x2x1
jax: 0.10.0
libtpu: 0.0.40
codegen_flags: <defaults>
</compile_context>

<pallas_src>
import jax
import jax.numpy as jnp
import numpy as np
from jax.experimental import pallas as pl
from jax.experimental.pallas import tpu as pltpu


# Logical widths from the PyTorch module.
ENC = 202      # encoder width
FWD = 327      # forward-model hidden width
INV = 400      # inverse-model hidden width

# Lane-padded widths (multiples of 128) used inside the kernel.
ENC_P = 256
FWD_P = 384
INV_P = 512
ACT_P = 128    # padded width of the inverse-model output (mean)


def _round_up(x, m):
    return ((x + m - 1) // m) * m


def icm_kernel(
    # activations (batch-tiled); state_ref carries [state | action],
    # next_state_ref carries [next_state | zeros]
    state_ref, next_state_ref,
    # collapsed + action-augmented encoder
    w_enc_ref, b_enc_ref,
    # forward model (F1 fused: action rows live at input lanes [ENC:ENC+A])
    wf1_ref, bf1_ref, wf2_ref, bf2_ref, wf3_ref, bf3_ref,
    # inverse model (I1 split into state-rows and next-state-rows)
    wi1s_ref, wi1n_ref, bi1_ref, wi2_ref, bi2_ref, wi3_ref, bi3_ref,
    # outputs (bf16)
    mean_ref, pred_next_state_ref, next_state_enc_ref,
):
    f32 = jnp.float32
    bf16 = jnp.bfloat16

    def mm(x, w_ref):  # bf16 MXU matmul, f32 accumulation
        return jnp.dot(x.astype(bf16), w_ref[...], preferred_element_type=f32)

    def relu(x):
        return jnp.maximum(x, 0.0)

    # --- shared encoder (NO activations in the reference module) ------------
    # Two independent matmuls against the resident collapsed weight (no
    # concat / slice).  The augmented weight's identity rows deposit the raw
    # action into pad lanes [ENC:ENC+A] of s_enc, staging it for F1 for free.
    s_enc = mm(state_ref[...], w_enc_ref) + b_enc_ref[...]        # [TB, ENC_P]
    ns_enc = mm(next_state_ref[...], w_enc_ref) + b_enc_ref[...]  # pad lanes 0
    s_enc16 = s_enc.astype(bf16)
    ns_enc16 = ns_enc.astype(bf16)

    # --- forward model: pred_next_state = relu(F3(relu(F2(relu(F1([a,s])))))) ---
    # Single fused matmul: wf1 rows [ENC:ENC+A] are the original action rows.
    phi = relu(jnp.dot(s_enc16, wf1_ref[...], preferred_element_type=f32)
               + bf1_ref[...])
    phi = relu(mm(phi, wf2_ref) + bf2_ref[...])
    pred_ns = relu(mm(phi, wf3_ref) + bf3_ref[...])

    # --- inverse model: pred_action = relu(I3(relu(I2(relu(I1([s,ns])))))) ---
    # wi1s rows [ENC:] are zero, so the action lanes inside s_enc16 do not
    # leak into the inverse model.
    h = relu(jnp.dot(s_enc16, wi1s_ref[...], preferred_element_type=f32)
             + jnp.dot(ns_enc16, wi1n_ref[...], preferred_element_type=f32)
             + bi1_ref[...])
    h = relu(mm(h, wi2_ref) + bi2_ref[...])
    pred_a = relu(mm(h, wi3_ref) + bi3_ref[...])

    mean_ref[...] = jnp.tanh(pred_a).astype(mean_ref.dtype)
    pred_next_state_ref[...] = pred_ns.astype(pred_next_state_ref.dtype)
    next_state_enc_ref[...] = ns_enc.astype(next_state_enc_ref.dtype)


_PARAM_KEYS = (
    "w_enc", "b_enc",
    "wf1", "bf1", "wf2", "bf2", "wf3", "bf3",
    "wi1s", "wi1n", "bi1", "wi2", "bi2", "wi3", "bi3",
)


def prepare_params(params):
    """Host-side, once-per-parameters preprocessing.

    * collapse the activation-free 3-layer encoder into one linear,
    * augment the collapsed encoder with an identity block so the action
      (appended to the state input) lands in pad lanes [ENC:ENC+A] of the
      state encoding,
    * relocate F1's action rows to those lanes so F1 is a single matmul,
    * split I1 into state / next-state weight blocks,
    * zero-pad all feature dims to 128-lane multiples (zero padding is exact
      through relu / tanh, and padded output lanes are sliced off on host),
    * cast the large weights to bfloat16 (biases stay f32),
    * precompute the input-independent Normal scale = softplus(exp(std)).
    """
    f32 = jnp.float32
    bf16 = jnp.bfloat16
    A = params["Wi3"].shape[1]
    S = params["Wi"].shape[0]
    assert A <= ENC_P - ENC, "action_size must fit the encoder pad lanes"

    def pad2(x, rows, cols):
        return jnp.zeros((rows, cols), f32).at[: x.shape[0], : x.shape[1]].set(x)

    # encoder(x) = x @ (Wi Wh Wo) + ((bi Wh + bh) Wo + bo)
    w_enc = params["Wi"] @ params["Wh"] @ params["Wo"]
    b_enc = (params["bi"] @ params["Wh"] + params["bh"]) @ params["Wo"] + params["bo"]

    # Augmented encoder weight: rows 0:S encode the state, rows S:S+A are an
    # identity that copies the raw action into output lanes [ENC:ENC+A].
    w_enc_aug = jnp.zeros((S + A, ENC_P), f32)
    w_enc_aug = w_enc_aug.at[:S, :ENC].set(w_enc)
    w_enc_aug = w_enc_aug.at[S:S + A, ENC:ENC + A].set(jnp.eye(A, dtype=f32))

    # F1 with its action rows relocated to input lanes [ENC:ENC+A].
    wf1 = params["Wf1"]            # rows: [action (A) | state_enc (ENC)]
    wf1_fused = jnp.zeros((ENC_P, FWD_P), f32)
    wf1_fused = wf1_fused.at[:ENC, :FWD].set(wf1[A:])
    wf1_fused = wf1_fused.at[ENC:ENC + A, :FWD].set(wf1[:A])

    wi1 = params["Wi1"]            # rows: [state_enc | next_state_enc]

    return dict(
        w_enc=w_enc_aug.astype(bf16),
        b_enc=pad2(b_enc, 1, ENC_P),
        wf1=wf1_fused.astype(bf16),
        bf1=pad2(params["bf1"], 1, FWD_P),
        wf2=pad2(params["Wf2"], FWD_P, FWD_P).astype(bf16),
        bf2=pad2(params["bf2"], 1, FWD_P),
        wf3=pad2(params["Wf3"], FWD_P, ENC_P).astype(bf16),
        bf3=pad2(params["bf3"], 1, ENC_P),
        wi1s=pad2(wi1[:ENC], ENC_P, INV_P).astype(bf16),    # rows [ENC:] stay 0
        wi1n=pad2(wi1[ENC:], ENC_P, INV_P).astype(bf16),
        bi1=pad2(params["bi1"], 1, INV_P),
        wi2=pad2(params["Wi2"], INV_P, INV_P).astype(bf16),
        bi2=pad2(params["bi2"], 1, INV_P),
        wi3=pad2(params["Wi3"], INV_P, ACT_P).astype(bf16),
        bi3=pad2(params["bi3"], 1, ACT_P),
        scale_row=jax.nn.softplus(jnp.exp(params["std"])),  # [1, A]
    )


@jax.jit
def icm_forward(state, next_state, action, prep):
    B, S = state.shape
    A = action.shape[1]

    # --- batch tiling --------------------------------------------------------
    # TB stays a multiple of 16 (bf16 sublane packing).  Batches that fit in
    # two tiles are split into exactly 2 grid steps so the "parallel" axis
    # feeds both v7x TensorCores; larger batches tile at TB_MAX=512 to
    # amortise the ~0.35 us/step fixed overhead.
    TB_MAX = 512
    Bp0 = _round_up(B, 16)
    if Bp0 <= 2 * TB_MAX:
        TB = max(16, _round_up(Bp0, 32) // 2)
        Bp = 2 * TB
    else:
        TB = TB_MAX
        Bp = _round_up(B, TB)
    grid = (Bp // TB,)

    # Ride the action along with the state (consumed by the identity rows of
    # the augmented encoder weight); next_state rides with zeros.
    state_aug = jnp.concatenate([state, action.astype(state.dtype)], axis=1)
    next_state_aug = jnp.concatenate(
        [next_state, jnp.zeros((B, A), next_state.dtype)], axis=1)

    def pad_batch(x):
        if x.shape[0] == Bp:
            return x
        return jnp.zeros((Bp,) + x.shape[1:], x.dtype).at[: x.shape[0]].set(x)

    state_p = pad_batch(state_aug)
    next_state_p = pad_batch(next_state_aug)

    def batch_spec(width):
        return pl.BlockSpec((TB, width), lambda i: (i, 0))

    def weight_spec(w):
        # Full-array block + constant index map -> weight stays VMEM-resident
        # across grid steps (DMA'd once, never re-fetched).  Weight
        # double-buffering costs ~1.9 MB; total VMEM at TB=512 is ~11 MiB,
        # well inside the 32 MiB limit requested below, so no pipeline_mode
        # override is needed.
        return pl.BlockSpec(w.shape, lambda i: (0, 0))

    weights = [prep[k] for k in _PARAM_KEYS]

    in_specs = ([batch_spec(S + A), batch_spec(S + A)]
                + [weight_spec(w) for w in weights])
    out_specs = (batch_spec(ACT_P), batch_spec(ENC_P), batch_spec(ENC_P))
    # bf16 outputs: output writeback dominates HBM traffic on v6e/v7x; the
    # host upcasts back to f32 after slicing.
    out_shapes = (
        jax.ShapeDtypeStruct((Bp, ACT_P), jnp.bfloat16),   # padded tanh(pred_action)
        jax.ShapeDtypeStruct((Bp, ENC_P), jnp.bfloat16),   # padded pred_next_state
        jax.ShapeDtypeStruct((Bp, ENC_P), jnp.bfloat16),   # padded next_state encoding
    )

    mean_p, pred_ns_p, ns_enc_p = pl.pallas_call(
        icm_kernel,
        grid=grid,
        in_specs=in_specs,
        out_specs=out_specs,
        out_shape=out_shapes,
        compiler_params=pltpu.CompilerParams(
            dimension_semantics=("parallel",),
            vmem_limit_bytes=32 * 1024 * 1024,
        ),
    )(state_p, next_state_p, *weights)

    mean = mean_p[:B, :A].astype(jnp.float32)
    pred_next_state = pred_ns_p[:B, :ENC].astype(jnp.float32)
    next_state_enc = ns_enc_p[:B, :ENC].astype(jnp.float32)
    # The Normal distribution itself is represented by its (mean, scale) pair.
    scale = jnp.broadcast_to(prep["scale_row"], mean.shape)
    return (mean, scale), pred_next_state, next_state_enc


def init_params(key, state_size, action_size):
    """nn.Linear-style U(-1/sqrt(fan_in), +1/sqrt(fan_in)) init.
    Weights are stored [in_features, out_features] so each layer is x @ W + b."""
    def linear(k, fan_in, fan_out):
        kw, kb = jax.random.split(k)
        bound = 1.0 / float(np.sqrt(fan_in))
        w = jax.random.uniform(kw, (fan_in, fan_out), jnp.float32, -bound, bound)
        b = jax.random.uniform(kb, (1, fan_out), jnp.float32, -bound, bound)
        return w, b

    keys = jax.random.split(key, 9)
    p = {}
    p["Wi"], p["bi"] = linear(keys[0], state_size, ENC)
    p["Wh"], p["bh"] = linear(keys[1], ENC, ENC)
    p["Wo"], p["bo"] = linear(keys[2], ENC, ENC)
    p["Wf1"], p["bf1"] = linear(keys[3], ENC + action_size, FWD)
    p["Wf2"], p["bf2"] = linear(keys[4], FWD, FWD)
    p["Wf3"], p["bf3"] = linear(keys[5], FWD, ENC)
    p["Wi1"], p["bi1"] = linear(keys[6], 2 * ENC, INV)
    p["Wi2"], p["bi2"] = linear(keys[7], INV, INV)
    p["Wi3"], p["bi3"] = linear(keys[8], INV, action_size)
    p["std"] = jnp.ones((1, action_size), jnp.float32)
    return p


def icm_reference_f32(state, next_state, action, params):
    """Full-precision pure-JAX mirror of the PyTorch forward (semantic golden)."""
    relu = jax.nn.relu

    def lin(x, w, b):
        return x @ w + b

    def enc(x):
        return lin(lin(lin(x, params["Wi"], params["bi"]),
                       params["Wh"], params["bh"]),
                   params["Wo"], params["bo"])

    s_enc, ns_enc = enc(state), enc(next_state)
    phi = relu(lin(jnp.concatenate([action, s_enc], axis=1), params["Wf1"], params["bf1"]))
    phi = relu(lin(phi, params["Wf2"], params["bf2"]))
    pred_ns = relu(lin(phi, params["Wf3"], params["bf3"]))
    h = relu(lin(jnp.concatenate([s_enc, ns_enc], axis=1), params["Wi1"], params["bi1"]))
    h = relu(lin(h, params["Wi2"], params["bi2"]))
    pred_a = relu(lin(h, params["Wi3"], params["bi3"]))
    mean = jnp.tanh(pred_a)
    scale = jnp.broadcast_to(jax.nn.softplus(jnp.exp(params["std"])), mean.shape)
    return (mean, scale), pred_ns, ns_enc


def icm_reference_prepared(state, next_state, action, prep):
    """Pure-JAX mirror of the kernel math (collapsed / augmented / padded
    bf16 matmuls with f32 accumulation, bf16 outputs) — precision-matched."""
    bf16, f32 = jnp.bfloat16, jnp.float32
    relu = jax.nn.relu

    def mm(x, w):
        return jnp.dot(x.astype(bf16), w, preferred_element_type=f32)

    B = state.shape[0]
    A = prep["scale_row"].shape[1]
    state_aug = jnp.concatenate([state, action.astype(state.dtype)], axis=1)
    next_state_aug = jnp.concatenate(
        [next_state, jnp.zeros((B, A), next_state.dtype)], axis=1)

    s_enc = mm(state_aug, prep["w_enc"]) + prep["b_enc"]
    ns_enc = mm(next_state_aug, prep["w_enc"]) + prep["b_enc"]
    phi = relu(mm(s_enc, prep["wf1"]) + prep["bf1"])
    phi = relu(mm(phi, prep["wf2"]) + prep["bf2"])
    pred_ns = relu(mm(phi, prep["wf3"]) + prep["bf3"])
    h = relu(mm(s_enc, prep["wi1s"]) + mm(ns_enc, prep["wi1n"]) + prep["bi1"])
    h = relu(mm(h, prep["wi2"]) + prep["bi2"])
    pred_a = relu(mm(h, prep["wi3"]) + prep["bi3"])

    mean = jnp.tanh(pred_a).astype(bf16).astype(f32)[:, :A]
    pred_ns_out = pred_ns.astype(bf16).astype(f32)[:, :ENC]
    ns_enc_out = ns_enc.astype(bf16).astype(f32)[:, :ENC]
    scale = jnp.broadcast_to(prep["scale_row"], mean.shape)
    return (mean, scale), pred_ns_out, ns_enc_out


if __name__ == "__main__":
    batch = 2
    state_size = 16
    action_size = 8

    key = jax.random.PRNGKey(0)
    k_state, k_next, k_act, k_params = jax.random.split(key, 4)

    state = jax.random.normal(k_state, (batch, state_size), jnp.float32)
    next_state = jax.random.normal(k_next, (batch, state_size), jnp.float32)
    action = jax.random.normal(k_act, (batch, action_size), jnp.float32)

    params = init_params(k_params, state_size, action_size)
    prep = prepare_params(params)

    (mean, scale), pred_ns, ns_enc = icm_forward(state, next_state, action, prep)
    jax.block_until_ready((mean, scale, pred_ns, ns_enc))

    # 1) Precision-matched check (same collapsed/augmented/bf16 math in pure
    #    JAX).  Tolerance absorbs up to ~1 bf16 ulp of output-rounding skew
    #    between MXU and XLA accumulation orders.
    (mean_p, scale_p), pred_ns_p, ns_enc_p = icm_reference_prepared(
        state, next_state, action, prep)
    np.testing.assert_allclose(np.asarray(mean), np.asarray(mean_p), atol=1e-2, rtol=1e-2)
    np.testing.assert_allclose(np.asarray(scale), np.asarray(scale_p), atol=1e-2, rtol=1e-2)
    np.testing.assert_allclose(np.asarray(pred_ns), np.asarray(pred_ns_p), atol=1e-2, rtol=1e-2)
    np.testing.assert_allclose(np.asarray(ns_enc), np.asarray(ns_enc_p), atol=1e-2, rtol=1e-2)

    # 2) Semantic check vs. the full-precision mirror of the PyTorch module
    #    (validates encoder collapse / action fold / weight split / padding;
    #    loose tolerance accounts for bf16 weights, bf16 action and bf16
    #    outputs).
    (mean_r, scale_r), pred_ns_r, ns_enc_r = icm_reference_f32(
        state, next_state, action, params)
    np.testing.assert_allclose(np.asarray(mean), np.asarray(mean_r), atol=5e-2, rtol=5e-2)
    np.testing.assert_allclose(np.asarray(scale), np.asarray(scale_r), atol=5e-2, rtol=5e-2)
    np.testing.assert_allclose(np.asarray(pred_ns), np.asarray(pred_ns_r), atol=5e-2, rtol=5e-2)
    np.testing.assert_allclose(np.asarray(ns_enc), np.asarray(ns_enc_r), atol=5e-2, rtol=5e-2)

    print("KERNEL_OK")
</pallas_src>

<mosaic_0001>
module attributes {stable_mosaic.version = 11 : i64} {
  func.func @icm_kernel(%arg0: i32, %arg1: memref<16x24xf32, #tpu.memory_space<vmem>>, %arg2: memref<16x24xf32, #tpu.memory_space<vmem>>, %arg3: memref<24x256xbf16, #tpu.memory_space<vmem>>, %arg4: memref<1x256xf32, #tpu.memory_space<vmem>>, %arg5: memref<256x384xbf16, #tpu.memory_space<vmem>>, %arg6: memref<1x384xf32, #tpu.memory_space<vmem>>, %arg7: memref<384x384xbf16, #tpu.memory_space<vmem>>, %arg8: memref<1x384xf32, #tpu.memory_space<vmem>>, %arg9: memref<384x256xbf16, #tpu.memory_space<vmem>>, %arg10: memref<1x256xf32, #tpu.memory_space<vmem>>, %arg11: memref<256x512xbf16, #tpu.memory_space<vmem>>, %arg12: memref<256x512xbf16, #tpu.memory_space<vmem>>, %arg13: memref<1x512xf32, #tpu.memory_space<vmem>>, %arg14: memref<512x512xbf16, #tpu.memory_space<vmem>>, %arg15: memref<1x512xf32, #tpu.memory_space<vmem>>, %arg16: memref<512x128xbf16, #tpu.memory_space<vmem>>, %arg17: memref<1x128xf32, #tpu.memory_space<vmem>>, %arg18: memref<16x128xbf16, #tpu.memory_space<vmem>>, %arg19: memref<16x256xbf16, #tpu.memory_space<vmem>>, %arg20: memref<16x256xbf16, #tpu.memory_space<vmem>>) attributes {dimension_semantics = [#tpu.dimension_semantics<parallel>], iteration_bounds = array<i64: 2>, scalar_prefetch = 0 : i64, scratch_operands = 0 : i64, tpu.core_type = #tpu.core_type<tc>, window_params = [{transform_indices = @transform_0, window_bounds = array<i64: 16, 24>}, {transform_indices = @transform_1, window_bounds = array<i64: 16, 24>}, {pipeline_mode = #tpu.pipeline_mode<synchronous>, transform_indices = @transform_2, window_bounds = array<i64: 24, 256>}, {pipeline_mode = #tpu.pipeline_mode<synchronous>, transform_indices = @transform_3, window_bounds = array<i64: 1, 256>}, {pipeline_mode = #tpu.pipeline_mode<synchronous>, transform_indices = @transform_4, window_bounds = array<i64: 256, 384>}, {pipeline_mode = #tpu.pipeline_mode<synchronous>, transform_indices = @transform_5, window_bounds = array<i64: 1, 384>}, {pipeline_mode = #tpu.pipeline_mode<synchronous>, transform_indices = @transform_6, window_bounds = array<i64: 384, 384>}, {pipeline_mode = #tpu.pipeline_mode<synchronous>, transform_indices = @transform_7, window_bounds = array<i64: 1, 384>}, {pipeline_mode = #tpu.pipeline_mode<synchronous>, transform_indices = @transform_8, window_bounds = array<i64: 384, 256>}, {pipeline_mode = #tpu.pipeline_mode<synchronous>, transform_indices = @transform_9, window_bounds = array<i64: 1, 256>}, {pipeline_mode = #tpu.pipeline_mode<synchronous>, transform_indices = @transform_10, window_bounds = array<i64: 256, 512>}, {pipeline_mode = #tpu.pipeline_mode<synchronous>, transform_indices = @transform_11, window_bounds = array<i64: 256, 512>}, {pipeline_mode = #tpu.pipeline_mode<synchronous>, transform_indices = @transform_12, window_bounds = array<i64: 1, 512>}, {pipeline_mode = #tpu.pipeline_mode<synchronous>, transform_indices = @transform_13, window_bounds = array<i64: 512, 512>}, {pipeline_mode = #tpu.pipeline_mode<synchronous>, transform_indices = @transform_14, window_bounds = array<i64: 1, 512>}, {pipeline_mode = #tpu.pipeline_mode<synchronous>, transform_indices = @transform_15, window_bounds = array<i64: 512, 128>}, {pipeline_mode = #tpu.pipeline_mode<synchronous>, transform_indices = @transform_16, window_bounds = array<i64: 1, 128>}, {transform_indices = @transform_17, window_bounds = array<i64: 16, 128>}, {transform_indices = @transform_18, window_bounds = array<i64: 16, 256>}, {transform_indices = @transform_19, window_bounds = array<i64: 16, 256>}]} {
    %c0 = arith.constant 0 : index
    %c0_0 = arith.constant 0 : index
    %0 = vector.load %arg1[%c0, %c0_0] : memref<16x24xf32, #tpu.memory_space<vmem>>, vector<16x24xf32>
    %1 = arith.truncf %0 : vector<16x24xf32> to vector<16x24xbf16>
    %c0_1 = arith.constant 0 : index
    %c0_2 = arith.constant 0 : index
    %2 = vector.load %arg3[%c0_1, %c0_2] : memref<24x256xbf16, #tpu.memory_space<vmem>>, vector<24x256xbf16>
    %cst = arith.constant dense<0.000000e+00> : vector<16x256xf32>
    %3 = tpu.matmul %1, %2, %cst {dimension_numbers = #tpu.dot_dimension_numbers<[1], [0], [0], [1], [0, 0, 1, 1], [], []>} : vector<16x24xbf16>, vector<24x256xbf16>, vector<16x256xf32> -> vector<16x256xf32>
    %c0_3 = arith.constant 0 : index
    %c0_4 = arith.constant 0 : index
    %4 = vector.load %arg4[%c0_3, %c0_4] : memref<1x256xf32, #tpu.memory_space<vmem>>, vector<1x256xf32>
    %5 = vector.broadcast %4 : vector<1x256xf32> to vector<16x256xf32>
    %6 = arith.addf %3, %5 : vector<16x256xf32>
    %c0_5 = arith.constant 0 : index
    %c0_6 = arith.constant 0 : index
    %7 = vector.load %arg2[%c0_5, %c0_6] : memref<16x24xf32, #tpu.memory_space<vmem>>, vector<16x24xf32>
    %8 = arith.truncf %7 : vector<16x24xf32> to vector<16x24xbf16>
    %c0_7 = arith.constant 0 : index
    %c0_8 = arith.constant 0 : index
    %9 = vector.load %arg3[%c0_7, %c0_8] : memref<24x256xbf16, #tpu.memory_space<vmem>>, vector<24x256xbf16>
    %cst_9 = arith.constant dense<0.000000e+00> : vector<16x256xf32>
    %10 = tpu.matmul %8, %9, %cst_9 {dimension_numbers = #tpu.dot_dimension_numbers<[1], [0], [0], [1], [0, 0, 1, 1], [], []>} : vector<16x24xbf16>, vector<24x256xbf16>, vector<16x256xf32> -> vector<16x256xf32>
    %c0_10 = arith.constant 0 : index
    %c0_11 = arith.constant 0 : index
    %11 = vector.load %arg4[%c0_10, %c0_11] : memref<1x256xf32, #tpu.memory_space<vmem>>, vector<1x256xf32>
    %12 = vector.broadcast %11 : vector<1x256xf32> to vector<16x256xf32>
    %13 = arith.addf %10, %12 : vector<16x256xf32>
    %14 = arith.truncf %6 : vector<16x256xf32> to vector<16x256xbf16>
    %15 = arith.truncf %13 : vector<16x256xf32> to vector<16x256xbf16>
    %c0_12 = arith.constant 0 : index
    %c0_13 = arith.constant 0 : index
    %16 = vector.load %arg5[%c0_12, %c0_13] : memref<256x384xbf16, #tpu.memory_space<vmem>>, vector<256x384xbf16>
    %cst_14 = arith.constant dense<0.000000e+00> : vector<16x384xf32>
    %17 = tpu.matmul %14, %16, %cst_14 {dimension_numbers = #tpu.dot_dimension_numbers<[1], [0], [0], [1], [0, 0, 1, 1], [], []>} : vector<16x256xbf16>, vector<256x384xbf16>, vector<16x384xf32> -> vector<16x384xf32>
    %c0_15 = arith.constant 0 : index
    %c0_16 = arith.constant 0 : index
    %18 = vector.load %arg6[%c0_15, %c0_16] : memref<1x384xf32, #tpu.memory_space<vmem>>, vector<1x384xf32>
    %19 = vector.broadcast %18 : vector<1x384xf32> to vector<16x384xf32>
    %20 = arith.addf %17, %19 : vector<16x384xf32>
    %cst_17 = arith.constant 0.000000e+00 : f32
    %21 = vector.broadcast %cst_17 : f32 to vector<16x384xf32>
    %22 = arith.maximumf %20, %21 : vector<16x384xf32>
    %23 = arith.truncf %22 : vector<16x384xf32> to vector<16x384xbf16>
    %c0_18 = arith.constant 0 : index
    %c0_19 = arith.constant 0 : index
    %24 = vector.load %arg7[%c0_18, %c0_19] : memref<384x384xbf16, #tpu.memory_space<vmem>>, vector<384x384xbf16>
    %cst_20 = arith.constant dense<0.000000e+00> : vector<16x384xf32>
    %25 = tpu.matmul %23, %24, %cst_20 {dimension_numbers = #tpu.dot_dimension_numbers<[1], [0], [0], [1], [0, 0, 1, 1], [], []>} : vector<16x384xbf16>, vector<384x384xbf16>, vector<16x384xf32> -> vector<16x384xf32>
    %c0_21 = arith.constant 0 : index
    %c0_22 = arith.constant 0 : index
    %26 = vector.load %arg8[%c0_21, %c0_22] : memref<1x384xf32, #tpu.memory_space<vmem>>, vector<1x384xf32>
    %27 = vector.broadcast %26 : vector<1x384xf32> to vector<16x384xf32>
    %28 = arith.addf %25, %27 : vector<16x384xf32>
    %cst_23 = arith.constant 0.000000e+00 : f32
    %29 = vector.broadcast %cst_23 : f32 to vector<16x384xf32>
    %30 = arith.maximumf %28, %29 : vector<16x384xf32>
    %31 = arith.truncf %30 : vector<16x384xf32> to vector<16x384xbf16>
    %c0_24 = arith.constant 0 : index
    %c0_25 = arith.constant 0 : index
    %32 = vector.load %arg9[%c0_24, %c0_25] : memref<384x256xbf16, #tpu.memory_space<vmem>>, vector<384x256xbf16>
    %cst_26 = arith.constant dense<0.000000e+00> : vector<16x256xf32>
    %33 = tpu.matmul %31, %32, %cst_26 {dimension_numbers = #tpu.dot_dimension_numbers<[1], [0], [0], [1], [0, 0, 1, 1], [], []>} : vector<16x384xbf16>, vector<384x256xbf16>, vector<16x256xf32> -> vector<16x256xf32>
    %c0_27 = arith.constant 0 : index
    %c0_28 = arith.constant 0 : index
    %34 = vector.load %arg10[%c0_27, %c0_28] : memref<1x256xf32, #tpu.memory_space<vmem>>, vector<1x256xf32>
    %35 = vector.broadcast %34 : vector<1x256xf32> to vector<16x256xf32>
    %36 = arith.addf %33, %35 : vector<16x256xf32>
    %cst_29 = arith.constant 0.000000e+00 : f32
    %37 = vector.broadcast %cst_29 : f32 to vector<16x256xf32>
    %38 = arith.maximumf %36, %37 : vector<16x256xf32>
    %c0_30 = arith.constant 0 : index
    %c0_31 = arith.constant 0 : index
    %39 = vector.load %arg11[%c0_30, %c0_31] : memref<256x512xbf16, #tpu.memory_space<vmem>>, vector<256x512xbf16>
    %cst_32 = arith.constant dense<0.000000e+00> : vector<16x512xf32>
    %40 = tpu.matmul %14, %39, %cst_32 {dimension_numbers = #tpu.dot_dimension_numbers<[1], [0], [0], [1], [0, 0, 1, 1], [], []>} : vector<16x256xbf16>, vector<256x512xbf16>, vector<16x512xf32> -> vector<16x512xf32>
    %c0_33 = arith.constant 0 : index
    %c0_34 = arith.constant 0 : index
    %41 = vector.load %arg12[%c0_33, %c0_34] : memref<256x512xbf16, #tpu.memory_space<vmem>>, vector<256x512xbf16>
    %cst_35 = arith.constant dense<0.000000e+00> : vector<16x512xf32>
    %42 = tpu.matmul %15, %41, %cst_35 {dimension_numbers = #tpu.dot_dimension_numbers<[1], [0], [0], [1], [0, 0, 1, 1], [], []>} : vector<16x256xbf16>, vector<256x512xbf16>, vector<16x512xf32> -> vector<16x512xf32>
    %43 = arith.addf %40, %42 : vector<16x512xf32>
    %c0_36 = arith.constant 0 : index
    %c0_37 = arith.constant 0 : index
    %44 = vector.load %arg13[%c0_36, %c0_37] : memref<1x512xf32, #tpu.memory_space<vmem>>, vector<1x512xf32>
    %45 = vector.broadcast %44 : vector<1x512xf32> to vector<16x512xf32>
    %46 = arith.addf %43, %45 : vector<16x512xf32>
    %cst_38 = arith.constant 0.000000e+00 : f32
    %47 = vector.broadcast %cst_38 : f32 to vector<16x512xf32>
    %48 = arith.maximumf %46, %47 : vector<16x512xf32>
    %49 = arith.truncf %48 : vector<16x512xf32> to vector<16x512xbf16>
    %c0_39 = arith.constant 0 : index
    %c0_40 = arith.constant 0 : index
    %50 = vector.load %arg14[%c0_39, %c0_40] : memref<512x512xbf16, #tpu.memory_space<vmem>>, vector<512x512xbf16>
    %cst_41 = arith.constant dense<0.000000e+00> : vector<16x512xf32>
    %51 = tpu.matmul %49, %50, %cst_41 {dimension_numbers = #tpu.dot_dimension_numbers<[1], [0], [0], [1], [0, 0, 1, 1], [], []>} : vector<16x512xbf16>, vector<512x512xbf16>, vector<16x512xf32> -> vector<16x512xf32>
    %c0_42 = arith.constant 0 : index
    %c0_43 = arith.constant 0 : index
    %52 = vector.load %arg15[%c0_42, %c0_43] : memref<1x512xf32, #tpu.memory_space<vmem>>, vector<1x512xf32>
    %53 = vector.broadcast %52 : vector<1x512xf32> to vector<16x512xf32>
    %54 = arith.addf %51, %53 : vector<16x512xf32>
    %cst_44 = arith.constant 0.000000e+00 : f32
    %55 = vector.broadcast %cst_44 : f32 to vector<16x512xf32>
    %56 = arith.maximumf %54, %55 : vector<16x512xf32>
    %57 = arith.truncf %56 : vector<16x512xf32> to vector<16x512xbf16>
    %c0_45 = arith.constant 0 : index
    %c0_46 = arith.constant 0 : index
    %58 = vector.load %arg16[%c0_45, %c0_46] : memref<512x128xbf16, #tpu.memory_space<vmem>>, vector<512x128xbf16>
    %cst_47 = arith.constant dense<0.000000e+00> : vector<16x128xf32>
    %59 = tpu.matmul %57, %58, %cst_47 {dimension_numbers = #tpu.dot_dimension_numbers<[1], [0], [0], [1], [0, 0, 1, 1], [], []>} : vector<16x512xbf16>, vector<512x128xbf16>, vector<16x128xf32> -> vector<16x128xf32>
    %c0_48 = arith.constant 0 : index
    %c0_49 = arith.constant 0 : index
    %60 = vector.load %arg17[%c0_48, %c0_49] : memref<1x128xf32, #tpu.memory_space<vmem>>, vector<1x128xf32>
    %61 = vector.broadcast %60 : vector<1x128xf32> to vector<16x128xf32>
    %62 = arith.addf %59, %61 : vector<16x128xf32>
    %cst_50 = arith.constant 0.000000e+00 : f32
    %63 = vector.broadcast %cst_50 : f32 to vector<16x128xf32>
    %64 = arith.maximumf %62, %63 : vector<16x128xf32>
    %65 = math.tanh %64 : vector<16x128xf32>
    %66 = arith.truncf %65 : vector<16x128xf32> to vector<16x128xbf16>
    %c0_51 = arith.constant 0 : index
    %c0_52 = arith.constant 0 : index
    %67 = vector.load %arg18[%c0_51, %c0_52] : memref<16x128xbf16, #tpu.memory_space<vmem>>, vector<16x128xbf16>
    tpu.vector_store %arg18[%c0_51, %c0_52], %66 {strides = array<i32>} : memref<16x128xbf16, #tpu.memory_space<vmem>>, vector<16x128xbf16>,
    %68 = arith.truncf %38 : vector<16x256xf32> to vector<16x256xbf16>
    %c0_53 = arith.constant 0 : index
    %c0_54 = arith.constant 0 : index
    %69 = vector.load %arg19[%c0_53, %c0_54] : memref<16x256xbf16, #tpu.memory_space<vmem>>, vector<16x256xbf16>
    tpu.vector_store %arg19[%c0_53, %c0_54], %68 {strides = array<i32>} : memref<16x256xbf16, #tpu.memory_space<vmem>>, vector<16x256xbf16>,
    %70 = arith.truncf %13 : vector<16x256xf32> to vector<16x256xbf16>
    %c0_55 = arith.constant 0 : index
    %c0_56 = arith.constant 0 : index
    %71 = vector.load %arg20[%c0_55, %c0_56] : memref<16x256xbf16, #tpu.memory_space<vmem>>, vector<16x256xbf16>
    tpu.vector_store %arg20[%c0_55, %c0_56], %70 {strides = array<i32>} : memref<16x256xbf16, #tpu.memory_space<vmem>>, vector<16x256xbf16>,
    return
  }
  func.func @transform_0(%arg0: i32) -> (i32, i32) {
    %c0_i32 = arith.constant 0 : i32
    %c0_i32_0 = arith.constant 0 : i32
    return %arg0, %c0_i32 : i32, i32
  }
  func.func @transform_1(%arg0: i32) -> (i32, i32) {
    %c0_i32 = arith.constant 0 : i32
    %c0_i32_0 = arith.constant 0 : i32
    return %arg0, %c0_i32 : i32, i32
  }
  func.func @transform_2(%arg0: i32) -> (i32, i32) {
    %c0_i32 = arith.constant 0 : i32
    %c0_i32_0 = arith.constant 0 : i32
    %c0_i32_1 = arith.constant 0 : i32
    return %c0_i32, %c0_i32_0 : i32, i32
  }
  func.func @transform_3(%arg0: i32) -> (i32, i32) {
    %c0_i32 = arith.constant 0 : i32
    %c0_i32_0 = arith.constant 0 : i32
    %c0_i32_1 = arith.constant 0 : i32
    return %c0_i32, %c0_i32_0 : i32, i32
  }
  func.func @transform_4(%arg0: i32) -> (i32, i32) {
    %c0_i32 = arith.constant 0 : i32
    %c0_i32_0 = arith.constant 0 : i32
    %c0_i32_1 = arith.constant 0 : i32
    return %c0_i32, %c0_i32_0 : i32, i32
  }
  func.func @transform_5(%arg0: i32) -> (i32, i32) {
    %c0_i32 = arith.constant 0 : i32
    %c0_i32_0 = arith.constant 0 : i32
    %c0_i32_1 = arith.constant 0 : i32
    return %c0_i32, %c0_i32_0 : i32, i32
  }
  func.func @transform_6(%arg0: i32) -> (i32, i32) {
    %c0_i32 = arith.constant 0 : i32
    %c0_i32_0 = arith.constant 0 : i32
    %c0_i32_1 = arith.constant 0 : i32
    return %c0_i32, %c0_i32_0 : i32, i32
  }
  func.func @transform_7(%arg0: i32) -> (i32, i32) {
    %c0_i32 = arith.constant 0 : i32
    %c0_i32_0 = arith.constant 0 : i32
    %c0_i32_1 = arith.constant 0 : i32
    return %c0_i32, %c0_i32_0 : i32, i32
  }
  func.func @transform_8(%arg0: i32) -> (i32, i32) {
    %c0_i32 = arith.constant 0 : i32
    %c0_i32_0 = arith.constant 0 : i32
    %c0_i32_1 = arith.constant 0 : i32
    return %c0_i32, %c0_i32_0 : i32, i32
  }
  func.func @transform_9(%arg0: i32) -> (i32, i32) {
    %c0_i32 = arith.constant 0 : i32
    %c0_i32_0 = arith.constant 0 : i32
    %c0_i32_1 = arith.constant 0 : i32
    return %c0_i32, %c0_i32_0 : i32, i32
  }
  func.func @transform_10(%arg0: i32) -> (i32, i32) {
    %c0_i32 = arith.constant 0 : i32
    %c0_i32_0 = arith.constant 0 : i32
    %c0_i32_1 = arith.constant 0 : i32
    return %c0_i32, %c0_i32_0 : i32, i32
  }
  func.func @transform_11(%arg0: i32) -> (i32, i32) {
    %c0_i32 = arith.constant 0 : i32
    %c0_i32_0 = arith.constant 0 : i32
    %c0_i32_1 = arith.constant 0 : i32
    return %c0_i32, %c0_i32_0 : i32, i32
  }
  func.func @transform_12(%arg0: i32) -> (i32, i32) {
    %c0_i32 = arith.constant 0 : i32
    %c0_i32_0 = arith.constant 0 : i32
    %c0_i32_1 = arith.constant 0 : i32
    return %c0_i32, %c0_i32_0 : i32, i32
  }
  func.func @transform_13(%arg0: i32) -> (i32, i32) {
    %c0_i32 = arith.constant 0 : i32
    %c0_i32_0 = arith.constant 0 : i32
    %c0_i32_1 = arith.constant 0 : i32
    return %c0_i32, %c0_i32_0 : i32, i32
  }
  func.func @transform_14(%arg0: i32) -> (i32, i32) {
    %c0_i32 = arith.constant 0 : i32
    %c0_i32_0 = arith.constant 0 : i32
    %c0_i32_1 = arith.constant 0 : i32
    return %c0_i32, %c0_i32_0 : i32, i32
  }
  func.func @transform_15(%arg0: i32) -> (i32, i32) {
    %c0_i32 = arith.constant 0 : i32
    %c0_i32_0 = arith.constant 0 : i32
    %c0_i32_1 = arith.constant 0 : i32
    return %c0_i32, %c0_i32_0 : i32, i32
  }
  func.func @transform_16(%arg0: i32) -> (i32, i32) {
    %c0_i32 = arith.constant 0 : i32
    %c0_i32_0 = arith.constant 0 : i32
    %c0_i32_1 = arith.constant 0 : i32
    return %c0_i32, %c0_i32_0 : i32, i32
  }
  func.func @transform_17(%arg0: i32) -> (i32, i32) {
    %c0_i32 = arith.constant 0 : i32
    %c0_i32_0 = arith.constant 0 : i32
    return %arg0, %c0_i32 : i32, i32
  }
  func.func @transform_18(%arg0: i32) -> (i32, i32) {
    %c0_i32 = arith.constant 0 : i32
    %c0_i32_0 = arith.constant 0 : i32
    return %arg0, %c0_i32 : i32, i32
  }
  func.func @transform_19(%arg0: i32) -> (i32, i32) {
    %c0_i32 = arith.constant 0 : i32
    %c0_i32_0 = arith.constant 0 : i32
    return %arg0, %c0_i32 : i32, i32
  }
}

</mosaic_0001>

<bundles_post_ra>
// kernel: icm_forward.1
= control target key start
LH: loop header
LB: loop body
LE: loop exit
PB: predicated region body
PF: predicated region fallthrough
CT: control target
= control target key end

     0   :  { %s6917_s0 = inlined_call_operand.vmem [shape: f32[32,24], index: 0, kind: input, shape index: {}]   ;;  %s6918_s1 = inlined_call_operand.vmem [shape: f32[32,24], index: 1, kind: input, shape index: {}]   ;;  %s6919_s2 = inlined_call_operand.vmem [shape: bf16[24,256], index: 2, kind: input, shape index: {}]   ;;  %s6920_s3 = inlined_call_operand.vmem [shape: f32[1,256], index: 3, kind: input, shape index: {}]   ;;  %s6921_s4 = inlined_call_operand.hbm [shape: bf16[256,384], index: 4, kind: input, shape index: {}]   ;;  %s6922_s5 = inlined_call_operand.vmem [shape: f32[1,384], index: 5, kind: input, shape index: {}]   ;;  %s6923_s6 = inlined_call_operand.hbm [shape: bf16[384,384], index: 6, kind: input, shape index: {}]   ;;  %s6924_s7 = inlined_call_operand.vmem [shape: f32[1,384], index: 7, kind: input, shape index: {}]   ;;  %s6925_s8 = inlined_call_operand.hbm [shape: bf16[384,256], index: 8, kind: input, shape index: {}]   ;;  %s6926_s9 = inlined_call_operand.vmem [shape: f32[1,256], index: 9, kind: input, shape index: {}]   ;;  %s6927_s10 = inlined_call_operand.hbm [shape: bf16[256,512], index: 10, kind: input, shape index: {}]   ;;  %s6928_s11 = inlined_call_operand.hbm [shape: bf16[256,512], index: 11, kind: input, shape index: {}]   ;;  %s6929_s12 = inlined_call_operand.vmem [shape: f32[1,512], index: 12, kind: input, shape index: {}]   ;;  %s6930_s13 = inlined_call_operand.hbm [shape: bf16[512,512], index: 13, kind: input, shape index: {}]   ;;  %s6931_s14 = inlined_call_operand.vmem [shape: f32[1,512], index: 14, kind: input, shape index: {}]   ;;  %s6932_s15 = inlined_call_operand.hbm [shape: bf16[512,128], index: 15, kind: input, shape index: {}]   ;;  %s6933_s16 = inlined_call_operand.vmem [shape: f32[1,128], index: 16, kind: input, shape index: {}]   ;;  %s6934_s17 = inlined_call_operand.vmem [shape: bf16[32,128], index: 17, kind: output, shape index: {0}]   ;;  %s6935_s18 = inlined_call_operand.vmem [shape: bf16[32,256], index: 18, kind: output, shape index: {1}]   ;;  %s6936_s19 = inlined_call_operand.vmem [shape: bf16[32,256], index: 19, kind: output, shape index: {2}]  }
   0x1   :  { %6942 = sst [smem:[#allocation17_spill]] %s6917_s0 }
   0x2   :  { %6943 = sst [smem:[#allocation18_spill]] %s6918_s1 }
   0x3   :  { %6944 = sst [smem:[#allocation19_spill]] %s6919_s2 }
   0x4   :  { %6945 = sst [smem:[#allocation20_spill]] %s6920_s3 }
   0x5   :  { %6946 = sst [smem:[#allocation21_spill]] %s6921_s4 }
   0x6   :  { %25 = vsyncpa [#allocation3], 0 }
   0x7   :  { %26 = vsyncpa [#allocation5], 0 }
   0x8   :  { %27 = vsyncpa [#allocation8], 0 }
   0x9   :  { %28 = vsyncpa [#allocation11], 0  ;;  %s6651_s0 = smov 0  }
   0xa LB: > { %s6938_s30 = sadd.s32 4294967295, %s6531_s0   ;;  %p4948_p0 = scmp.ge.s32.totalorder %s6531_s0, 1  ;;  %s6531_s0 = sphi %s6651_s0, %s34_s0  }
   0xb   : > { %p484_p1 = scmp.lt.s32.totalorder %s6531_s0, 3  ;;  %p6661_p2 = scmp.eq.s32.totalorder %s6938_s30, 0 }
   0xc   : > { %s6533_s1 = smov [#allocation4]   ;;  %s6534_s2 = smov [#allocation7]  }
   0xd   : > { %p6665_p3 = pnand %p4948_p0, %p484_p1  ;;  %s518_s22 = sshll.u32 %s6533_s1, 4  ;;  %s519_s22 = int_to_ptr.vmem [resolvable:$true] %s518_s22 }
   0xe   : > { %s550_s23 = sshll.u32 %s6534_s2, 4  ;;  %s6535_s25 = smov [#allocation10]   ;;  %s6671_s23 = int_to_ptr.vmem [resolvable:$true] %s550_s23 }
   0xf   : > { %p5608_p4 = pneg %p6665_p3  ;;  %s6679_s3 = sshll.u32 %s6535_s25, 4  ;;  %s580_s3 = int_to_ptr.vmem [resolvable:$true] %s6679_s3 }
  0x10   : > { %s6338_s27 = scalar_lea.vmem %s519_s22, 9216  ;;  %p6346_p10 = scmp.lt.s32.totalorder %s519_s22, %s519_s22 }
  0x11   : > { %p6675_p5 = pnand %p6661_p2, %p5608_p4  ;;  %p6339_p7 = scmp.ne.s32.totalorder %s519_s22, %s6338_s27 }
  0x12   : > { %p6347_p11 = scmp.lt.s32.totalorder %s6338_s27, %s6338_s27 }
  0x13   : > { %p6683_p6 = pneg %p6675_p5 }
  0x14   : > { %p6348_p12 = por %p6347_p11, %p6346_p10 }
  0x15   : > { %p6341_p8 = pnand %p6339_p7, %p6683_p6 }
  0x17   : > { %p6342_p9 = pneg %p6341_p8 }
  0x19   : > { %p6349_p13 = pnand %p6348_p12, %p6342_p9 }
  0x1b   : > { %6352 = shalt.err (!%p6349_p13)
}
  0x1c   : > { %s6939_s28 = smov 192   ;;  %s6537_s29 = smov 12  }
  0x1d   : > { %5614 = dma.hbm_to_vmem [thread:$0]  (!%p6675_p5), %s6923_s6, 9216, %s519_s22, [#allocation5], %s6939_s28, %s6939_s28, %s6537_s29  }
  0x1e   : > { %s6364_s25 = scalar_lea.vmem %s6671_s23, 8192  ;;  %p6372_p7 = scmp.lt.s32.totalorder %s6671_s23, %s6671_s23 }
  0x1f   : > { %p6365_p0 = scmp.ne.s32.totalorder %s6671_s23, %s6364_s25  ;;  %p6373_p8 = scmp.lt.s32.totalorder %s6364_s25, %s6364_s25 }
  0x21   : > { %p6367_p1 = pnand %p6365_p0, %p6683_p6  ;;  %p6374_p9 = por %p6373_p8, %p6372_p7 }
  0x23   : > { %p6368_p4 = pneg %p6367_p1 }
  0x25   : > { %p6375_p10 = pnand %p6374_p9, %p6368_p4 }
  0x27   : > { %6378 = shalt.err (!%p6375_p10)
}
  0x28   : > { %s6940_s27 = smov 256   ;;  %s6941_s30 = smov 16  }
  0x29   : > { %5620 = dma.hbm_to_vmem [thread:$0]  (!%p6675_p5), %s6927_s10, 8192, %s6671_s23, [#allocation8], %s6940_s27, %s6940_s27, %s6941_s30  }
  0x2a   : > { %s6540_s2 = smov [#allocation2]   ;;  %s6390_s28 = scalar_lea.vmem %s580_s3, 16384 }
  0x2b   : > { %s502_s25 = sshll.u32 %s6540_s2, 4  ;;  %p6391_p11 = scmp.ne.s32.totalorder %s580_s3, %s6390_s28  ;;  %s503_s25 = int_to_ptr.vmem [resolvable:$true] %s502_s25 }
  0x2c   : > { %p6398_p0 = scmp.lt.s32.totalorder %s580_s3, %s580_s3  ;;  %p6399_p1 = scmp.lt.s32.totalorder %s6390_s28, %s6390_s28 }
  0x2d   : > { %p6393_p12 = pnand %p6391_p11, %p6683_p6 }
  0x2e   : > { %p6400_p4 = por %p6399_p1, %p6398_p0 }
  0x2f   : > { %p6394_p13 = pneg %p6393_p12 }
  0x31   : > { %p6401_p7 = pnand %p6400_p4, %p6394_p13 }
  0x33   : > { %6404 = shalt.err (!%p6401_p7)
}
  0x34   : > { %5626 = dma.hbm_to_vmem [thread:$0]  (!%p6675_p5), %s6930_s13, 16384, %s580_s3, [#allocation11], %s6940_s27, %s6940_s27, %s6941_s30  }
  0x35   : > { %s6416_s1 = scalar_lea.vmem %s503_s25, 6144  ;;  %p6424_p11 = scmp.lt.s32.totalorder %s503_s25, %s503_s25 }
  0x36   : > { %p6417_p8 = scmp.ne.s32.totalorder %s503_s25, %s6416_s1  ;;  %p6425_p12 = scmp.lt.s32.totalorder %s6416_s1, %s6416_s1 }
  0x38   : > { %p6419_p9 = pnand %p6417_p8, %p6683_p6  ;;  %p6426_p13 = por %p6425_p12, %p6424_p11 }
  0x3a   : > { %p6420_p10 = pneg %p6419_p9 }
  0x3c   : > { %p6427_p0 = pnand %p6426_p13, %p6420_p10 }
  0x3e   : > { %6430 = shalt.err (!%p6427_p0)
}
  0x3f   : > { %s6951_s28 = smov 192   ;;  %s6952_s4 = sld [smem:[#allocation21_spill]] }
  0x40   : > { %s6541_s3 = smov [#allocation6]  }
  0x41   : > { %s534_s23 = sshll.u32 %s6541_s3, 4  ;;  %s535_s23 = int_to_ptr.vmem [resolvable:$true] %s534_s23 }
  0x42   : > { %s6442_s27 = scalar_lea.vmem %s535_s23, 6144  ;;  %p6450_p8 = scmp.lt.s32.totalorder %s535_s23, %s535_s23 }
  0x43   : > { %p6443_p1 = scmp.ne.s32.totalorder %s535_s23, %s6442_s27  ;;  %p6451_p9 = scmp.lt.s32.totalorder %s6442_s27, %s6442_s27 }
  0x45   : > { %5611 = dma.hbm_to_vmem [thread:$0]  (!%p6675_p5), %s6952_s4, 6144, %s503_s25, [#allocation3], %s6951_s28, %s6951_s28, %s6537_s29  }
  0x46   : > { %p6445_p4 = pnand %p6443_p1, %p6683_p6  ;;  %p6452_p10 = por %p6451_p9, %p6450_p8 }
  0x48   : > { %p6446_p7 = pneg %p6445_p4 }
  0x4a   : > { %p6453_p11 = pnand %p6452_p10, %p6446_p7 }
  0x4c   : > { %6456 = shalt.err (!%p6453_p11)
}
  0x4d   : > { %s6542_s1 = smov 128   ;;  %s6543_s30 = smov 8  }
  0x4e   : > { %5617 = dma.hbm_to_vmem [thread:$0]  (!%p6675_p5), %s6925_s8, 6144, %s535_s23, [#allocation5], %s6542_s1, %s6542_s1, %s6543_s30  }
  0x4f   : > { %s6544_s25 = smov [#allocation9]   ;;  %s6545_s22 = smov [#allocation12]  }
  0x50   : > { %s563_s28 = sshll.u32 %s6544_s25, 4  ;;  %s595_s3 = sshll.u32 %s6545_s22, 4  ;;  %s564_s28 = int_to_ptr.vmem [resolvable:$true] %s563_s28  ;;  %s596_s3 = int_to_ptr.vmem [resolvable:$true] %s595_s3 }
  0x51   : > { %s6468_s4 = scalar_lea.vmem %s564_s28, 8192  ;;  %p6476_p1 = scmp.lt.s32.totalorder %s564_s28, %s564_s28 }
  0x52   : > { %p6469_p12 = scmp.ne.s32.totalorder %s564_s28, %s6468_s4  ;;  %p6477_p4 = scmp.lt.s32.totalorder %s6468_s4, %s6468_s4 }
  0x54   : > { %p6471_p13 = pnand %p6469_p12, %p6683_p6  ;;  %p6478_p7 = por %p6477_p4, %p6476_p1 }
  0x56   : > { %p6472_p0 = pneg %p6471_p13 }
  0x58   : > { %p6479_p8 = pnand %p6478_p7, %p6472_p0 }
  0x5a   : > { %6482 = shalt.err (!%p6479_p8)
}
  0x5b   : > { %s6953_s27 = smov 16   ;;  %s6954_s30 = smov 256  }
  0x5c   : > { %5623 = dma.hbm_to_vmem [thread:$0]  (!%p6675_p5), %s6928_s11, 8192, %s564_s28, [#allocation8], %s6954_s30, %s6954_s30, %s6953_s27  }
  0x5d   : > { %s6494_s2 = scalar_lea.vmem %s596_s3, 4096  ;;  %p6502_p12 = scmp.lt.s32.totalorder %s596_s3, %s596_s3 }
  0x5e   : > { %p6495_p9 = scmp.ne.s32.totalorder %s596_s3, %s6494_s2  ;;  %p6503_p13 = scmp.lt.s32.totalorder %s6494_s2, %s6494_s2 }
  0x60   : > { %p6497_p10 = pnand %p6495_p9, %p6683_p6  ;;  %p6504_p1 = por %p6503_p13, %p6502_p12 }
  0x62   : > { %p6498_p11 = pneg %p6497_p10 }
  0x64   : > { %p6505_p0 = pnand %p6504_p1, %p6498_p11 }
  0x66   : > { %6508 = shalt.err (!%p6505_p0)
}
  0x67   : > { %s6546_s4 = smov 64   ;;  %s6547_s29 = smov 4  }
  0x68   : > { %5629 = dma.hbm_to_vmem [thread:$0]  (!%p6675_p5), %s6932_s15, 4096, %s596_s3, [#allocation11], %s6546_s4, %s6546_s4, %s6547_s29  }
  0x69   : > { %632 = sbr.rel (%p6665_p3) target bundleno = 1617 (0x651), region = 88 }
  0x6e   : > { %6514 = dma.done.wait (%p6661_p2), [#allocation3], 6144  }
  0x6f   : > { %6516 = vsyncadd (%p6661_p2), [#allocation3], 4294961152 }
  0x70   : > { %6518 = dma.done.wait (%p6661_p2), [#allocation5], 15360  }
  0x71   : > { %6520 = vsyncadd (%p6661_p2), [#allocation5], 4294951936 }
  0x72   : > { %6522 = dma.done.wait (%p6661_p2), [#allocation8], 16384  }
  0x73   : > { %6524 = vsyncadd (%p6661_p2), [#allocation8], 4294950912 }
  0x74   : > { %6526 = dma.done.wait (%p6661_p2), [#allocation11], 20480  }
  0x75   : > { %6528 = vsyncadd (%p6661_p2), [#allocation11], 4294946816  ;;  %s6955_s21 = sadd.s32 4294967295, %s6531_s0   ;;  %v6548_v0 = vmov 0   ;;  %s6956_s27 = sld [smem:[#allocation17_spill]]  ;;  %vm799_vm0 = vcmask 1043456   ;;  %v770_v63 = vlaneseq }
  0x76   : > { %s4965_s24 = sshll.u32 %s6955_s21, 1  ;;  %838 = vmatprep.mubr.bf16.mxu1 %v6548_v0  ;;  %s6957_s1 = sld [smem:[#allocation19_spill]]  ;;  %v5675_v8 = vld [vmem:[#allocation2 + $0xac] ss:$12 sps:$4 sm:$0xff]   ;;  %v5677_v9 = vld [vmem:[#allocation2 + $0xa8] ss:$12 sps:$4 sm:$0xff]  }
  0x77   : > { %p730_p3 = scmp.lt.s32.totalorder %s4965_s24, 3  ;;  %v5678_v11 = vld [vmem:[#allocation2 + $0x94] ss:$12 sps:$4 sm:$0xff]   ;;  %1239 = vmatprep.subr.bf16.mxu0 %v5675_v8  ;;  %v5680_v12 = vld [vmem:[#allocation2 + $0x90] ss:$12 sps:$4 sm:$0xff]   ;;  %vm795_vm1 = vcmask 195584  }
  0x78   : > { %1240 = vmatpush1.bf16.msra.mxu0 %v5677_v9  ;;  %v5681_v14 = vld [vmem:[#allocation2 + $0x7c] ss:$12 sps:$4 sm:$0xff]   ;;  %s6958_s28 = sld [smem:[#allocation18_spill]]  ;;  %v5683_v15 = vld [vmem:[#allocation2 + $0x78] ss:$12 sps:$4 sm:$0xff]   ;;  %vm6550_vm2 = vmmov 0  }
  0x79   : > { %s6961_s24 = smov (!%p730_p3, %s4965_s24), 3  ;;  %1241 = vmatprep.subr.bf16.mxu0 %v5678_v11  ;;  %v5684_v16 = vld [vmem:[#allocation2 + $0x64] ss:$12 sps:$4 sm:$0xff]   ;;  %v5686_v19 = vld [vmem:[#allocation2 + $0x60] ss:$12 sps:$4 sm:$0xff]   ;;  %s6959_s23 = sld [smem:[#allocation20_spill]] }
  0x7a   : > { %s6781_s26 = sshll.u32 %s6961_s24, 3  ;;  %v5687_v20 = vld [vmem:[#allocation2 + $0x4c] ss:$12 sps:$4 sm:$0xff]   ;;  %v5701_v22 = vld [vmem:[#allocation2 + $0x170] ss:$12 sps:$4 sm:$0xff]   ;;  %s4970_s22 = sshll.u32 %s6961_s24, 2 }
  0x7b   : > { %s733_s30 = scalar_lea.vmem %s6956_s27, %s6781_s26  ;;  %v5703_v23 = vld [vmem:[#allocation2 + $0xb0] ss:$12 sps:$4 sm:$0xff]   ;;  %v5689_v24 = vld [vmem:[#allocation2 + $0x48] ss:$12 sps:$4 sm:$0xff]   ;;  %v5706_v25 = vld [vmem:[#allocation2 + $0x158] ss:$12 sps:$4 sm:$0xff]   ;;  %s759_s4 = scalar_lea.vmem %s6936_s19, %s6781_s26 }
  0x7c   : > { %v767_v1 = vld [vmem:[%s6957_s1 + $0x10] sm:$0xff]  ;;  %v5672_v4 = vld [vmem:[%s6957_s1 + $0x4] ss:$8 sps:$4 sm:$0xff]   ;;  %v5674_v5 = vld [vmem:[%s6957_s1] ss:$8 sps:$4 sm:$0xff]   ;;  %1242 = vmatpush1.bf16.msra.mxu0 %v5680_v12 }
  0x7d   : > { %v4980_v2 = vcombine.high %v767_v1, %v767_v1  ;;  %v4979_v3 = vcombine.low %v767_v1, %v767_v1  ;;  %v762_v6 = vld [vmem:[%s733_s30] sm:$0xff]  ;;  %v763_v10 = vld [vmem:[%s733_s30 + $0x8] sm:$0xff]  ;;  %1243 = vmatprep.subr.bf16.mxu0 %v5681_v14  ;;  %v5692_v28 = vld [vmem:[#allocation2 + $0x30] ss:$12 sps:$4 sm:$0xff]   ;;  %v6806_v1 = vshrl.u32 %v770_v63, 7 }
  0x7e   : > { %v764_v13 = vpack.c.bf16 %v763_v10, %v762_v6  ;;  %s739_s3 = scalar_lea.vmem %s6958_s28, %s6781_s26  ;;  %v5690_v26 = vld [vmem:[#allocation2 + $0x34] ss:$12 sps:$4 sm:$0xff]   ;;  %v5708_v27 = vld [vmem:[#allocation2 + $0x98] ss:$12 sps:$4 sm:$0xff]   ;;  %v5693_v30 = vld [vmem:[#allocation2 + $0x1c] ss:$12 sps:$4 sm:$0xff]  }
  0x7f   : > { %4981 = vmatprep.subr.msk.bf16.mxu1 %vm799_vm0, %v4980_v2  ;;  %v801_v7 = vsel %vm799_vm0, %v4979_v3, 0  ;;  %v849_v17 = vld [vmem:[%s739_s3] sm:$0xff]  ;;  %v850_v18 = vld [vmem:[%s739_s3 + $0x8] sm:$0xff]  ;;  %v5721_v37 = vld [vmem:[#allocation2 + $0x110] ss:$12 sps:$4 sm:$0xff]   ;;  %v6812_v3 = vsub.s32 1, %v6806_v1  ;;  %s745_s3 = scalar_lea.vmem %s6934_s17, %s4970_s22 }
  0x80   : > { %819 = vmatpush1.bf16.msra.mxu1 %v801_v7  ;;  %1244 = vmatpush1.bf16.msra.mxu0 %v5683_v15  ;;  %v851_v21 = vpack.c.bf16 %v850_v18, %v849_v17  ;;  %v5711_v29 = vld [vmem:[#allocation2 + $0x140] ss:$12 sps:$4 sm:$0xff]   ;;  %v5716_v32 = vld [vmem:[#allocation2 + $0x128] ss:$12 sps:$4 sm:$0xff]   ;;  %v5695_v33 = vld [vmem:[#allocation2 + $0x18] ss:$12 sps:$4 sm:$0xff]  }
  0x81   : > { %820 = vmatprep.subr.bf16.mxu1 %v5672_v4  ;;  %1245 = vmatprep.subr.bf16.mxu0 %v5684_v16  ;;  %v5713_v31 = vld [vmem:[#allocation2 + $0x80] ss:$12 sps:$4 sm:$0xff]   ;;  %v5696_v34 = vld [vmem:[#allocation2 + $0x4] ss:$12 sps:$4 sm:$0xff]   ;;  %v5718_v36 = vld [vmem:[#allocation2 + $0x68] ss:$12 sps:$4 sm:$0xff]  }
  0x82   : > { %v5698_v35 = vld [vmem:[#allocation2] ss:$12 sps:$4 sm:$0xff]   ;;  %v5723_v39 = vld [vmem:[#allocation2 + $0x50] ss:$12 sps:$4 sm:$0xff]   ;;  %v5702_v40 = vld [vmem:[#allocation2 + $0x168] ss:$12 sps:$4 sm:$0xff]  }
  0x83   : > { %v5699_v38 = vld [vmem:[#allocation2 + $0x16c] ss:$12 sps:$4 sm:$0xff]   ;;  %v5704_v41 = vld [vmem:[#allocation2 + $0x154] ss:$12 sps:$4 sm:$0xff]   ;;  %v5707_v42 = vld [vmem:[#allocation2 + $0x150] ss:$12 sps:$4 sm:$0xff]  }
  0x84   : > { %821 = vmatpush1.bf16.msra.mxu1 %v5674_v5  ;;  %1246 = vmatpush1.bf16.msra.mxu0 %v5686_v19  ;;  %v5709_v43 = vld [vmem:[#allocation2 + $0x13c] ss:$12 sps:$4 sm:$0xff]   ;;  %v5712_v44 = vld [vmem:[#allocation2 + $0x138] ss:$12 sps:$4 sm:$0xff]   ;;  %v5717_v46 = vld [vmem:[#allocation2 + $0x120] ss:$12 sps:$4 sm:$0xff]  }
  0x85   : > { %4983 = vmatprep.subr.msk.bf16.mxu1 %vm799_vm0, %v4980_v2  ;;  %1247 = vmatprep.subr.bf16.mxu0 %v5687_v20  ;;  %v5714_v45 = vld [vmem:[#allocation2 + $0x124] ss:$12 sps:$4 sm:$0xff]   ;;  %v5719_v47 = vld [vmem:[#allocation2 + $0x10c] ss:$12 sps:$4 sm:$0xff]   ;;  %v5722_v48 = vld [vmem:[#allocation2 + $0x108] ss:$12 sps:$4 sm:$0xff]  }
  0x86   : > { %v5724_v49 = vld [vmem:[#allocation2 + $0xf4] ss:$12 sps:$4 sm:$0xff]   ;;  %v5726_v50 = vld [vmem:[#allocation2 + $0xf8] ss:$12 sps:$4 sm:$0xff]   ;;  %v5727_v51 = vld [vmem:[#allocation2 + $0xf0] ss:$12 sps:$4 sm:$0xff]  }
  0x87   : > { %4982 = vmatmul.mubr.msk.bf16.vlgmr.msra.gmra.mxu1 %vm795_vm1, %v764_v13  ;;  %v5728_v52 = vld [vmem:[#allocation2 + $0x38] ss:$12 sps:$4 sm:$0xff]   ;;  %v5729_v53 = vld [vmem:[#allocation2 + $0xdc] ss:$12 sps:$4 sm:$0xff]   ;;  %v5731_v54 = vld [vmem:[#allocation2 + $0xe0] ss:$12 sps:$4 sm:$0xff]  }
  0x88   : > { %868 = vmatpush1.bf16.msra.mxu1 %v801_v7  ;;  %887 = vmatprep.mubr.bf16.mxu1 %v6548_v0  ;;  %v5732_v55 = vld [vmem:[#allocation2 + $0xd8] ss:$12 sps:$4 sm:$0xff]   ;;  %v5733_v56 = vld [vmem:[#allocation2 + $0x20] ss:$12 sps:$4 sm:$0xff]   ;;  %v5736_v58 = vld [vmem:[#allocation2 + $0xc8] ss:$12 sps:$4 sm:$0xff]  }
  0x89   : > { %869 = vmatprep.subr.bf16.mxu1 %v5672_v4  ;;  %1248 = vmatpush1.bf16.msra.mxu0 %v5689_v24  ;;  %v5734_v57 = vld [vmem:[#allocation2 + $0xc4] ss:$12 sps:$4 sm:$0xff]   ;;  %v5737_v59 = vld [vmem:[#allocation2 + $0xc0] ss:$12 sps:$4 sm:$0xff]   ;;  %v5738_v60 = vld [vmem:[#allocation2 + $0x8] ss:$12 sps:$4 sm:$0xff]  }
  0x8a   : > { %1249 = vmatprep.subr.bf16.mxu0 %v5690_v26  ;;  %v5741_v61 = vld [vmem:[#allocation4 + $0xac] ss:$12 sps:$4 sm:$0xff]   ;;  %v6809_v2 = vsub.s32 0, %v6806_v1  ;;  %v768_v4 = vld [vmem:[%s6959_s23] sm:$0x3]  ;;  %s752_s23 = scalar_lea.vmem %s6935_s18, %s6781_s26 }
  0x8b   : > { %v5768_v62 = vld [vmem:[#allocation4 + $0x22c] ss:$12 sps:$4 sm:$0xff]   ;;  %v777_v7 = vrot.slane %v768_v4, %v6812_v3  ;;  %v5739_v17 = vld [vmem:[#allocation4 + $0xa8] ss:$12 sps:$4 sm:$0xff]   ;;  %v5742_v26 = vld [vmem:[#allocation4 + $0x90] ss:$12 sps:$4 sm:$0xff]  }
  0x8c   : > { %870 = vmatpush1.bf16.msra.mxu1 %v5674_v5  ;;  %v773_v8 = vrot.slane %v768_v4, %v6809_v2  ;;  %v5766_v19 = vld [vmem:[#allocation4 + $0x228] ss:$12 sps:$4 sm:$0xff]   ;;  %v5793_v4 = vld [vmem:[#allocation4 + $0xf0] ss:$12 sps:$4 sm:$0xff]  }
  0x8d   : > { %5463 = vmatprep.subr.bf16.mxu1 %v5701_v22  ;;  %1250 = vmatpush1.bf16.msra.mxu0 %v5692_v28  ;;  %v5795_v63 = vld [vmem:[#allocation4 + $0xf4] ss:$12 sps:$4 sm:$0xff]  }
  0x8e   : > { %1251 = vmatprep.subr.bf16.mxu0 %v5693_v30  ;;  %v5747_v30 = vld [vmem:[#allocation4 + $0x7c] ss:$12 sps:$4 sm:$0xff]  }
  0x8f   : > { %4984 = vmatmul.mubr.msk.bf16.vlgmr.msra.gmra.mxu1 %vm795_vm1, %v851_v21  ;;  %v5744_v21 = vld [vmem:[#allocation4 + $0x94] ss:$12 sps:$4 sm:$0xff]  }
  0x90   : > { %5464 = vmatpush3.bf16.msra.mxu1 %v5703_v23  ;;  %v5774_v23 = vld [vmem:[#allocation4 + $0x214] ss:$12 sps:$4 sm:$0xff]  }
  0x91   : > { %5465 = vmatprep.subr.bf16.mxu1 %v5706_v25  ;;  %1252 = vmatpush1.bf16.msra.mxu0 %v5695_v33 }
  0x92   : > { %1253 = vmatprep.subr.bf16.mxu0 %v5696_v34 }
  0x94   : > { %5466 = vmatpush3.bf16.msra.mxu1 %v5708_v27 }
  0x95   : > { %5467 = vmatprep.subr.bf16.mxu1 %v5711_v29  ;;  %1254 = vmatpush1.bf16.msra.mxu0 %v5698_v35  ;;  %v5772_v29 = vld [vmem:[#allocation4 + $0x210] ss:$12 sps:$4 sm:$0xff]   ;;  %v5745_v35 = vld [vmem:[#allocation4 + $0x78] ss:$12 sps:$4 sm:$0xff]  }
  0x96   : > { %1255 = vmatprep.subr.bf16.mxu0 %v5699_v38  ;;  %v5778_v38 = vld [vmem:[#allocation4 + $0x1f8] ss:$12 sps:$4 sm:$0xff]  }
  0x98   : > { %5468 = vmatpush3.bf16.msra.mxu1 %v5713_v31 }
  0x99   : > { %5469 = vmatprep.subr.bf16.mxu1 %v5716_v32  ;;  %1256 = vmatpush2.bf16.msra.mxu0 %v5702_v40  ;;  %v5780_v32 = vld [vmem:[#allocation4 + $0x1fc] ss:$12 sps:$4 sm:$0xff]   ;;  %v5786_v40 = vld [vmem:[#allocation4 + $0x1e4] ss:$12 sps:$4 sm:$0xff]  }
  0x9a   : > { %1257 = vmatprep.subr.bf16.mxu0 %v5704_v41  ;;  %v5748_v41 = vld [vmem:[#allocation4 + $0x60] ss:$12 sps:$4 sm:$0xff]  }
  0x9c   : > { %5470 = vmatpush3.bf16.msra.mxu1 %v5718_v36 }
  0x9d   : > { %5471 = vmatprep.subr.bf16.mxu1 %v5721_v37  ;;  %1258 = vmatpush2.bf16.msra.mxu0 %v5707_v42  ;;  %v5784_v42 = vld [vmem:[#allocation4 + $0x1e0] ss:$12 sps:$4 sm:$0xff]  }
  0x9e   : > { %1259 = vmatprep.subr.bf16.mxu0 %v5709_v43  ;;  %v5753_v43 = vld [vmem:[#allocation4 + $0x4c] ss:$12 sps:$4 sm:$0xff]  }
  0xa0   : > { %5472 = vmatpush3.bf16.msra.mxu1 %v5723_v39  ;;  %v5750_v39 = vld [vmem:[#allocation4 + $0x64] ss:$12 sps:$4 sm:$0xff]  }
  0xa1   : > { %1260 = vmatpush2.bf16.msra.mxu0 %v5712_v44  ;;  %5473 = vmatprep.subr.bf16.mxu1 %v5726_v50  ;;  %v5792_v44 = vld [vmem:[#allocation4 + $0x1cc] ss:$12 sps:$4 sm:$0xff]  }
  0xa2   : > { %1261 = vmatprep.subr.bf16.mxu0 %v5714_v45  ;;  %v5751_v45 = vld [vmem:[#allocation4 + $0x48] ss:$12 sps:$4 sm:$0xff]   ;;  %v5757_v50 = vld [vmem:[#allocation4 + $0x18] ss:$12 sps:$4 sm:$0xff]  }
  0xa4   : > { %5474 = vmatpush3.bf16.msra.mxu1 %v5728_v52  ;;  %v5760_v52 = vld [vmem:[#allocation4] ss:$12 sps:$4 sm:$0xff]  }
  0xa5   : > { %1262 = vmatpush2.bf16.msra.mxu0 %v5717_v46  ;;  %5475 = vmatprep.subr.bf16.mxu1 %v5731_v54  ;;  %v5790_v46 = vld [vmem:[#allocation4 + $0x1c8] ss:$12 sps:$4 sm:$0xff]  }
  0xa6   : > { %1263 = vmatprep.subr.bf16.mxu0 %v5719_v47  ;;  %v5756_v47 = vld [vmem:[#allocation4 + $0x34] ss:$12 sps:$4 sm:$0xff]  }
  0xa7   : > { %v5763_v54 = vld [vmem:[#allocation4 + $0x168] ss:$12 sps:$4 sm:$0xff]  }
  0xa8   : > { %5476 = vmatpush3.bf16.msra.mxu1 %v5733_v56  ;;  %v5769_v56 = vld [vmem:[#allocation4 + $0x150] ss:$12 sps:$4 sm:$0xff]  }
  0xa9   : > { %1264 = vmatpush2.bf16.msra.mxu0 %v5722_v48  ;;  %5477 = vmatprep.subr.bf16.mxu1 %v5736_v58  ;;  %v5754_v48 = vld [vmem:[#allocation4 + $0x30] ss:$12 sps:$4 sm:$0xff]   ;;  %v5775_v58 = vld [vmem:[#allocation4 + $0x138] ss:$12 sps:$4 sm:$0xff]  }
  0xaa   : > { %1265 = vmatprep.subr.bf16.mxu0 %v5724_v49  ;;  %v5759_v49 = vld [vmem:[#allocation4 + $0x1c] ss:$12 sps:$4 sm:$0xff]  }
  0xac   : > { %5478 = vmatpush3.bf16.msra.mxu1 %v5738_v60  ;;  %v5781_v60 = vld [vmem:[#allocation4 + $0x120] ss:$12 sps:$4 sm:$0xff]  }
  0xad   : > { %1266 = vmatpush2.bf16.msra.mxu0 %v5727_v51  ;;  %1829 = vmatprep.subr.bf16.mxu1 %v5741_v61  ;;  %v5762_v51 = vld [vmem:[#allocation4 + $0x4] ss:$12 sps:$4 sm:$0xff]   ;;  %v5789_v61 = vld [vmem:[#allocation4 + $0x10c] ss:$12 sps:$4 sm:$0xff]  }
  0xae   : > { %1267 = vmatprep.subr.bf16.mxu0 %v5729_v53  ;;  %v5765_v53 = vld [vmem:[#allocation4 + $0x16c] ss:$12 sps:$4 sm:$0xff]  }
  0xb1   : > { %1268 = vmatpush2.bf16.msra.mxu0 %v5732_v55  ;;  %v5771_v55 = vld [vmem:[#allocation4 + $0x154] ss:$12 sps:$4 sm:$0xff]  }
  0xb2   : > { %1269 = vmatprep.subr.bf16.mxu0 %v5734_v57  ;;  %v5777_v57 = vld [vmem:[#allocation4 + $0x13c] ss:$12 sps:$4 sm:$0xff]  }
  0xb5   : > { %1270 = vmatpush2.bf16.msra.mxu0 %v5737_v59  ;;  %v5783_v59 = vld [vmem:[#allocation4 + $0x124] ss:$12 sps:$4 sm:$0xff]  }
  0xb6   : > { %1872 = vmatprep.subr.bf16.mxu0 %v5768_v62  ;;  %v5787_v62 = vld [vmem:[#allocation4 + $0x108] ss:$12 sps:$4 sm:$0xff]  }
 0x147   : > { %v840_v5 = vpop.f32.mrf.mxu1 }
 0x148   : > { %v841_v14 = vadd.f32 %v840_v5, %v773_v8  ;;  %v5798_v5 = vld [vmem:[#allocation4 + $0x1b4] ss:$12 sps:$4 sm:$0xff]  }
 0x149   : > { %v842_v6 = vpop.f32.mrf.mxu1 }
 0x14a   : > { %v843_v12 = vadd.f32 %v842_v6, %v777_v7  ;;  %v5796_v6 = vld [vmem:[#allocation4 + $0x1b0] ss:$12 sps:$4 sm:$0xff]  }
 0x14b   : > { %v844_v9 = vpop.f32.mrf.mxu1 }
 0x14c   : > { %v845_v10 = vadd.f32 %v844_v9, %v773_v8  ;;  %v5804_v9 = vld [vmem:[#allocation4 + $0x19c] ss:$12 sps:$4 sm:$0xff]  }
 0x14d   : > { %v846_v11 = vpop.f32.mrf.mxu1 }
 0x14e   : > { %v847_v13 = vadd.f32 %v846_v11, %v777_v7  ;;  %v6821_v20 = vpack.c.bf16 %v845_v10, %v841_v14  ;;  %v5802_v10 = vld [vmem:[#allocation4 + $0x198] ss:$12 sps:$4 sm:$0xff]   ;;  %v5808_v14 = vld [vmem:[#allocation4 + $0x180] ss:$12 sps:$4 sm:$0xff]  }
 0x14f   : > { %v889_v15 = vpop.f32.mrf.mxu1  ;;  %v5807_v11 = vld [vmem:[#allocation4 + $0xc4] ss:$12 sps:$4 sm:$0xff]  }
 0x150   : > { %v6819_v16 = vpack.c.bf16 %v847_v13, %v843_v12  ;;  %v890_v18 = vadd.f32 %v889_v15, %v773_v8  ;;  %v5805_v12 = vld [vmem:[#allocation4 + $0xc0] ss:$12 sps:$4 sm:$0xff]   ;;  %v5810_v13 = vld [vmem:[#allocation4 + $0x184] ss:$12 sps:$4 sm:$0xff]  }
 0x151   : > { %v891_v22 = vpop.f32.mrf.mxu1  ;;  %v5811_v15 = vld [vmem:[#allocation4 + $0x170] ss:$12 sps:$4 sm:$0xff]  }
 0x152   : > { %1271 = vmatprep.mubr.bf16.mxu0 %v6819_v16  ;;  %1314 = vmatprep.mubr.bf16.mxu1 %v6819_v16  ;;  %v892_v24 = vadd.f32 %v891_v22, %v777_v7 }
 0x153   : > { %1272 = vmatmul.mubr.bf16.vlgmr.msra.gmra.mxu0 %v6821_v20  ;;  %1315 = vmatmul.mubr.bf16.vlgmr.msra.gmra.mxu1 %v6821_v20  ;;  %v893_v25 = vpop.f32.mrf.mxu1 }
 0x154   : > { %1830 = vmatpush1.bf16.msra.mxu1 %v5739_v17  ;;  %v5456_v27 = vpack.c.bf16 %v892_v24, %v890_v18  ;;  %v894_v28 = vadd.f32 %v893_v25, %v773_v8  ;;  %1873 = vmatpush1.bf16.msra.mxu0 %v5766_v19  ;;  %v5799_v8 = vld [vmem:[#allocation4 + $0xd8] ss:$12 sps:$4 sm:$0xff]   ;;  %v6549_v17 = vmov 0.0   ;;  %v6841_v19 = vsub.s32 2, %v6806_v1 }
 0x155   : > { %1831 = vmatprep.subr.bf16.mxu1 %v5744_v21  ;;  %v895_v31 = vpop.f32.mrf.mxu1  ;;  %1874 = vmatprep.subr.bf16.mxu0 %v5774_v23 }
 0x156   : > { %4735 = vst [vmem:[%s759_s4] sm:$0xff] %v5456_v27  ;;  %v6831_v33 = vpack.c.bf16 %v894_v28, %v890_v18  ;;  %v896_v34 = vadd.f32 %v895_v31, %v777_v7  ;;  %1904 = vmatprep.mubr.bf16.mxu0 %v6548_v0  ;;  %v5801_v7 = vld [vmem:[#allocation4 + $0xdc] ss:$12 sps:$4 sm:$0xff]   ;;  %v966_v18 = vld [vmem:[%s6922_s5] sm:$0x7] }
 0x157   : > { %v975_v23 = vrot.slane %v966_v18, %v6812_v3  ;;  %v979_v27 = vrot.slane %v966_v18, %v6841_v19 }
 0x158   : > { %1832 = vmatpush1.bf16.msra.mxu1 %v5742_v26  ;;  %v6834_v36 = vpack.c.bf16 %v896_v34, %v892_v24  ;;  %v5457_v37 = vpack.c.bf16 %v896_v34, %v894_v28  ;;  %1875 = vmatpush1.bf16.msra.mxu0 %v5772_v29  ;;  %v971_v24 = vrot.slane %v966_v18, %v6809_v2  ;;  %v5840_v18 = vld [vmem:[#allocation6 + $0x64] ss:$8 sps:$4 sm:$0xff]  }
 0x159   : > { %1833 = vmatprep.subr.bf16.mxu1 %v5747_v30  ;;  %1876 = vmatprep.subr.bf16.mxu0 %v5780_v32 }
 0x15a   : > { %4736 = vst [vmem:[%s759_s4 + $0x8] sm:$0xff] %v5457_v37 }
 0x15c   : > { %1834 = vmatpush1.bf16.msra.mxu1 %v5745_v35  ;;  %1877 = vmatpush1.bf16.msra.mxu0 %v5778_v38 }
 0x15d   : > { %1835 = vmatprep.subr.bf16.mxu1 %v5750_v39  ;;  %1878 = vmatprep.subr.bf16.mxu0 %v5786_v40 }
 0x160   : > { %1836 = vmatpush1.bf16.msra.mxu1 %v5748_v41  ;;  %1879 = vmatpush1.bf16.msra.mxu0 %v5784_v42 }
 0x161   : > { %1837 = vmatprep.subr.bf16.mxu1 %v5753_v43  ;;  %1880 = vmatprep.subr.bf16.mxu0 %v5792_v44 }
 0x164   : > { %1838 = vmatpush1.bf16.msra.mxu1 %v5751_v45  ;;  %1881 = vmatpush1.bf16.msra.mxu0 %v5790_v46 }
 0x165   : > { %1839 = vmatprep.subr.bf16.mxu1 %v5756_v47  ;;  %1882 = vmatprep.subr.bf16.mxu0 %v5798_v5  ;;  %v5826_v5 = vld [vmem:[#allocation4 + $0xf8] ss:$12 sps:$4 sm:$0xff]  }
 0x168   : > { %1840 = vmatpush1.bf16.msra.mxu1 %v5754_v48  ;;  %1883 = vmatpush1.bf16.msra.mxu0 %v5796_v6  ;;  %v5827_v6 = vld [vmem:[#allocation4 + $0x1b8] ss:$12 sps:$4 sm:$0xff]  }
 0x169   : > { %1841 = vmatprep.subr.bf16.mxu1 %v5759_v49  ;;  %1884 = vmatprep.subr.bf16.mxu0 %v5804_v9  ;;  %v5812_v49 = vld [vmem:[#allocation4 + $0x230] ss:$12 sps:$4 sm:$0xff]   ;;  %v5830_v9 = vld [vmem:[#allocation4 + $0x1a0] ss:$12 sps:$4 sm:$0xff]  }
 0x16c   : > { %1842 = vmatpush1.bf16.msra.mxu1 %v5757_v50  ;;  %1885 = vmatpush1.bf16.msra.mxu0 %v5802_v10  ;;  %v5831_v10 = vld [vmem:[#allocation4 + $0x20] ss:$12 sps:$4 sm:$0xff]  }
 0x16d   : > { %1843 = vmatprep.subr.bf16.mxu1 %v5762_v51  ;;  %1886 = vmatprep.subr.bf16.mxu0 %v5810_v13  ;;  %v5813_v51 = vld [vmem:[#allocation4 + $0xb0] ss:$12 sps:$4 sm:$0xff]   ;;  %v5834_v13 = vld [vmem:[#allocation4 + $0x8] ss:$12 sps:$4 sm:$0xff]  }
 0x170   : > { %1844 = vmatpush1.bf16.msra.mxu1 %v5760_v52  ;;  %1887 = vmatpush1.bf16.msra.mxu0 %v5808_v14  ;;  %v5837_v14 = vld [vmem:[#allocation6 + $0x74] ss:$8 sps:$4 sm:$0xff]  }
 0x171   : > { %1845 = vmatprep.subr.bf16.mxu1 %v5765_v53  ;;  %5485 = vmatprep.subr.bf16.mxu0 %v5811_v15  ;;  %v5814_v53 = vld [vmem:[#allocation4 + $0x158] ss:$12 sps:$4 sm:$0xff]  }
 0x172   : > { %v5835_v15 = vld [vmem:[#allocation6 + $0x70] ss:$8 sps:$4 sm:$0xff]  }
 0x174   : > { %1846 = vmatpush2.bf16.msra.mxu1 %v5763_v54  ;;  %v5815_v54 = vld [vmem:[#allocation4 + $0x218] ss:$12 sps:$4 sm:$0xff]  }
 0x175   : > { %1847 = vmatprep.subr.bf16.mxu1 %v5771_v55  ;;  %v5816_v55 = vld [vmem:[#allocation4 + $0x98] ss:$12 sps:$4 sm:$0xff]  }
 0x178   : > { %1848 = vmatpush2.bf16.msra.mxu1 %v5769_v56  ;;  %v5817_v56 = vld [vmem:[#allocation4 + $0x140] ss:$12 sps:$4 sm:$0xff]  }
 0x179   : > { %1849 = vmatprep.subr.bf16.mxu1 %v5777_v57  ;;  %v5818_v57 = vld [vmem:[#allocation4 + $0x200] ss:$12 sps:$4 sm:$0xff]  }
 0x17c   : > { %1850 = vmatpush2.bf16.msra.mxu1 %v5775_v58  ;;  %v5819_v58 = vld [vmem:[#allocation4 + $0x80] ss:$12 sps:$4 sm:$0xff]  }
 0x17d   : > { %1851 = vmatprep.subr.bf16.mxu1 %v5783_v59  ;;  %v5820_v59 = vld [vmem:[#allocation4 + $0x128] ss:$12 sps:$4 sm:$0xff]  }
 0x180   : > { %1852 = vmatpush2.bf16.msra.mxu1 %v5781_v60  ;;  %v5821_v60 = vld [vmem:[#allocation4 + $0x1e8] ss:$12 sps:$4 sm:$0xff]  }
 0x181   : > { %1853 = vmatprep.subr.bf16.mxu1 %v5789_v61  ;;  %v5822_v61 = vld [vmem:[#allocation4 + $0x68] ss:$12 sps:$4 sm:$0xff]  }
 0x184   : > { %1854 = vmatpush2.bf16.msra.mxu1 %v5787_v62  ;;  %v5823_v62 = vld [vmem:[#allocation4 + $0x110] ss:$12 sps:$4 sm:$0xff]  }
 0x185   : > { %1855 = vmatprep.subr.bf16.mxu1 %v5795_v63  ;;  %v5824_v63 = vld [vmem:[#allocation4 + $0x1d0] ss:$12 sps:$4 sm:$0xff]  }
 0x188   : > { %1856 = vmatpush2.bf16.msra.mxu1 %v5793_v4  ;;  %v5825_v4 = vld [vmem:[#allocation4 + $0x50] ss:$12 sps:$4 sm:$0xff]  }
 0x189   : > { %1857 = vmatprep.subr.bf16.mxu1 %v5801_v7  ;;  %v5828_v7 = vld [vmem:[#allocation4 + $0x38] ss:$12 sps:$4 sm:$0xff]  }
 0x18c   : > { %1858 = vmatpush2.bf16.msra.mxu1 %v5799_v8  ;;  %v5829_v8 = vld [vmem:[#allocation4 + $0xe0] ss:$12 sps:$4 sm:$0xff]  }
 0x18d   : > { %1859 = vmatprep.subr.bf16.mxu1 %v5807_v11  ;;  %v5832_v11 = vld [vmem:[#allocation4 + $0xc8] ss:$12 sps:$4 sm:$0xff]  }
 0x190   : > { %1860 = vmatpush2.bf16.msra.mxu1 %v5805_v12  ;;  %v5833_v12 = vld [vmem:[#allocation4 + $0x188] ss:$12 sps:$4 sm:$0xff]  }
 0x191   : > { %5560 = vmatprep.subr.bf16.mxu1 %v6549_v17 }
 0x213   : > { %v1273_v21 = vpop.f32.mrf.mxu0  ;;  %v5479_v22 = vpop.f32.mrf.mxu1 }
 0x214   : > { %v1274_v34 = vadd.f32 %v1273_v21, %v971_v24  ;;  %v5838_v21 = vld [vmem:[#allocation6 + $0x60] ss:$8 sps:$4 sm:$0xff]  }
 0x215   : > { %v1275_v25 = vpop.f32.mrf.mxu0  ;;  %v5480_v26 = vpop.f32.mrf.mxu1 }
 0x216   : > { %v5481_v28 = vadd.f32 %v5480_v26, %v5479_v22  ;;  %v1276_v31 = vadd.f32 %v1275_v25, %v975_v23  ;;  %v1323_v45 = vmax.f32 %v1274_v34, 0.0  ;;  %v5843_v22 = vld [vmem:[#allocation6 + $0x54] ss:$8 sps:$4 sm:$0xff]   ;;  %v5847_v26 = vld [vmem:[#allocation6 + $0x30] ss:$8 sps:$4 sm:$0xff]  }
 0x217   : > { %v1277_v29 = vpop.f32.mrf.mxu0  ;;  %v5482_v30 = vpop.f32.mrf.mxu1  ;;  %v5849_v25 = vld [vmem:[#allocation6 + $0x34] ss:$8 sps:$4 sm:$0xff]   ;;  %v5859_v34 = vld [vmem:[#allocation6 + $0xf0] ss:$8 sps:$4 sm:$0xff]  }
 0x218   : > { %v1278_v32 = vadd.f32 %v1277_v29, %v971_v24  ;;  %v1317_v38 = vadd.f32 %v5481_v28, %v979_v27  ;;  %v1324_v42 = vmax.f32 %v1276_v31, 0.0  ;;  %v5844_v24 = vld [vmem:[#allocation6 + $0x40] ss:$8 sps:$4 sm:$0xff]   ;;  %v5853_v29 = vld [vmem:[#allocation6 + $0x10] ss:$8 sps:$4 sm:$0xff]  }
 0x219   : > { %v1279_v35 = vpop.f32.mrf.mxu0  ;;  %v5483_v37 = vpop.f32.mrf.mxu1  ;;  %v5850_v28 = vld [vmem:[#allocation6 + $0x20] ss:$8 sps:$4 sm:$0xff]  }
 0x21a   : > { %v1280_v39 = vadd.f32 %v1279_v35, %v975_v23  ;;  %v5484_v40 = vadd.f32 %v5483_v37, %v5482_v30  ;;  %v1326_v41 = vmax.f32 %v1278_v32, 0.0  ;;  %v1325_v46 = vmax.f32 %v1317_v38, 0.0  ;;  %v5841_v23 = vld [vmem:[#allocation6 + $0x50] ss:$8 sps:$4 sm:$0xff]   ;;  %v5858_v30 = vld [vmem:[#allocation6 + $0x4] ss:$8 sps:$4 sm:$0xff]  }
 0x21b   : > { %v5856_v31 = vld [vmem:[#allocation6] ss:$8 sps:$4 sm:$0xff]   ;;  %v5861_v32 = vld [vmem:[#allocation6 + $0xf4] ss:$8 sps:$4 sm:$0xff]   ;;  %v5864_v35 = vld [vmem:[#allocation6 + $0xe4] ss:$8 sps:$4 sm:$0xff]  }
 0x21c   : > { %v1327_v43 = vmax.f32 %v1280_v39, 0.0  ;;  %v1320_v44 = vadd.f32 %v5484_v40, %v979_v27  ;;  %v6846_v50 = vpack.c.bf16 %v1326_v41, %v1323_v45  ;;  %v5852_v27 = vld [vmem:[#allocation6 + $0x24] ss:$8 sps:$4 sm:$0xff]   ;;  %v5862_v37 = vld [vmem:[#allocation6 + $0xe0] ss:$8 sps:$4 sm:$0xff]  }
 0x21d   : > { %v5867_v38 = vld [vmem:[#allocation6 + $0xd4] ss:$8 sps:$4 sm:$0xff]   ;;  %v5865_v39 = vld [vmem:[#allocation6 + $0xd0] ss:$8 sps:$4 sm:$0xff]   ;;  %v5870_v40 = vld [vmem:[#allocation6 + $0xc4] ss:$8 sps:$4 sm:$0xff]  }
 0x21e   : > { %v1330_v47 = vpack.c.bf16 %v1327_v43, %v1324_v42  ;;  %v1328_v48 = vmax.f32 %v1320_v44, 0.0  ;;  %v5868_v41 = vld [vmem:[#allocation6 + $0xc0] ss:$8 sps:$4 sm:$0xff]   ;;  %v5873_v42 = vld [vmem:[#allocation6 + $0xb4] ss:$8 sps:$4 sm:$0xff]  }
 0x21f   : > { %v5871_v43 = vld [vmem:[#allocation6 + $0xb0] ss:$8 sps:$4 sm:$0xff]   ;;  %v5876_v44 = vld [vmem:[#allocation6 + $0xa4] ss:$8 sps:$4 sm:$0xff]   ;;  %v5888_v45 = vld [vmem:[#allocation6 + $0x174] ss:$8 sps:$4 sm:$0xff]  }
 0x220   : > { %v1331_v52 = vpack.c.bf16 %v1328_v48, %v1325_v46  ;;  %1861 = vmatprep.mubr.bf16.mxu1 %v1330_v47  ;;  %v5886_v46 = vld [vmem:[#allocation6 + $0x170] ss:$8 sps:$4 sm:$0xff]   ;;  %v5892_v48 = vld [vmem:[#allocation6 + $0x160] ss:$8 sps:$4 sm:$0xff]  }
 0x221   : > { %1862 = vmatmul.mubr.bf16.vlgmr.msra.gmra.mxu1 %v6846_v50 }
 0x222   : > { %5561 = vmatpush3.bf16.msra.mxu1 %v5812_v49  ;;  %1905 = vmatmul.mubr.bf16.vlgmr.msra.gmra.mxu0 %v1331_v52  ;;  %v5894_v49 = vld [vmem:[#allocation6 + $0x164] ss:$8 sps:$4 sm:$0xff]  }
 0x223   : > { %5486 = vmatpush3.bf16.msra.mxu0 %v5813_v51  ;;  %1947 = vmatprep.mubr.bf16.mxu0 %v1330_v47  ;;  %v5874_v47 = vld [vmem:[#allocation6 + $0xa0] ss:$8 sps:$4 sm:$0xff]   ;;  %v5877_v51 = vld [vmem:[#allocation6 + $0x90] ss:$8 sps:$4 sm:$0xff]  }
 0x224   : > { %5562 = vmatprep.subr.bf16.mxu1 %v6549_v17  ;;  %5487 = vmatprep.subr.bf16.mxu0 %v5814_v53  ;;  %v5900_v53 = vld [vmem:[#allocation6 + $0x154] ss:$8 sps:$4 sm:$0xff]  }
 0x225   : > { %5576 = vmatprep.mubr.msk.bf16.mxu1 %vm6550_vm2, %v6549_v17 }
 0x226   : > { %5563 = vmatpush3.bf16.msra.mxu1 %v5815_v54  ;;  %v5882_v54 = vld [vmem:[#allocation6 + $0x84] ss:$8 sps:$4 sm:$0xff]  }
 0x227   : > { %5488 = vmatpush3.bf16.msra.mxu0 %v5816_v55  ;;  %5564 = vmatprep.subr.bf16.mxu1 %v6549_v17  ;;  %v5880_v55 = vld [vmem:[#allocation6 + $0x80] ss:$8 sps:$4 sm:$0xff]  }
 0x228   : > { %5489 = vmatprep.subr.bf16.mxu0 %v5817_v56  ;;  %v5904_v56 = vld [vmem:[#allocation6 + $0x140] ss:$8 sps:$4 sm:$0xff]  }
 0x22a   : > { %5565 = vmatpush3.bf16.msra.mxu1 %v5818_v57  ;;  %v5906_v57 = vld [vmem:[#allocation6 + $0x144] ss:$8 sps:$4 sm:$0xff]  }
 0x22b   : > { %5490 = vmatpush3.bf16.msra.mxu0 %v5819_v58  ;;  %5566 = vmatprep.subr.bf16.mxu1 %v6549_v17  ;;  %v5885_v58 = vld [vmem:[#allocation9 + $0xec] ss:$16 sps:$4 sm:$0xff]  }
 0x22c   : > { %5491 = vmatprep.subr.bf16.mxu0 %v5820_v59  ;;  %v5912_v59 = vld [vmem:[#allocation6 + $0x134] ss:$8 sps:$4 sm:$0xff]  }
 0x22e   : > { %5567 = vmatpush3.bf16.msra.mxu1 %v5821_v60  ;;  %v5910_v60 = vld [vmem:[#allocation6 + $0x130] ss:$8 sps:$4 sm:$0xff]  }
 0x22f   : > { %5492 = vmatpush3.bf16.msra.mxu0 %v5822_v61  ;;  %5568 = vmatprep.subr.bf16.mxu1 %v6549_v17  ;;  %v5918_v61 = vld [vmem:[#allocation6 + $0x124] ss:$8 sps:$4 sm:$0xff]  }
 0x230   : > { %5493 = vmatprep.subr.bf16.mxu0 %v5823_v62  ;;  %v5916_v62 = vld [vmem:[#allocation6 + $0x120] ss:$8 sps:$4 sm:$0xff]  }
 0x232   : > { %5569 = vmatpush3.bf16.msra.mxu1 %v5824_v63  ;;  %v5924_v63 = vld [vmem:[#allocation6 + $0x114] ss:$8 sps:$4 sm:$0xff]  }
 0x233   : > { %5494 = vmatpush3.bf16.msra.mxu0 %v5825_v4  ;;  %5570 = vmatprep.subr.bf16.mxu1 %v6549_v17  ;;  %v5922_v4 = vld [vmem:[#allocation6 + $0x110] ss:$8 sps:$4 sm:$0xff]  }
 0x234   : > { %5495 = vmatprep.subr.bf16.mxu0 %v5826_v5  ;;  %v5930_v5 = vld [vmem:[#allocation6 + $0x104] ss:$8 sps:$4 sm:$0xff]  }
 0x236   : > { %5571 = vmatpush3.bf16.msra.mxu1 %v5827_v6  ;;  %v5928_v6 = vld [vmem:[#allocation6 + $0x100] ss:$8 sps:$4 sm:$0xff]  }
 0x237   : > { %5496 = vmatpush3.bf16.msra.mxu0 %v5828_v7  ;;  %5572 = vmatprep.subr.bf16.mxu1 %v6549_v17  ;;  %v5936_v7 = vld [vmem:[#allocation9 + $0xe4] ss:$16 sps:$4 sm:$0xff]  }
 0x238   : > { %5497 = vmatprep.subr.bf16.mxu0 %v5829_v8  ;;  %v1428_v8 = vld [vmem:[%s6924_s7] sm:$0x7] }
 0x23a   : > { %5573 = vmatpush3.bf16.msra.mxu1 %v5830_v9  ;;  %v1437_v9 = vrot.slane %v1428_v8, %v6812_v3 }
 0x23b   : > { %5498 = vmatpush3.bf16.msra.mxu0 %v5831_v10  ;;  %5574 = vmatprep.subr.bf16.mxu1 %v6549_v17  ;;  %v5846_v17 = vld [vmem:[#allocation6 + $0x44] ss:$8 sps:$4 sm:$0xff]   ;;  %v1433_v10 = vrot.slane %v1428_v8, %v6809_v2 }
 0x23c   : > { %5499 = vmatprep.subr.bf16.mxu0 %v5832_v11 }
 0x23e   : > { %5575 = vmatpush3.bf16.msra.mxu1 %v5833_v12 }
 0x23f   : > { %5500 = vmatpush3.bf16.msra.mxu0 %v5834_v13  ;;  %2349 = vmatprep.subr.bf16.mxu1 %v5888_v45  ;;  %v5907_v45 = vld [vmem:[#allocation9 + $0x68] ss:$16 sps:$4 sm:$0xff]  }
 0x240   : > { %2306 = vmatprep.subr.bf16.mxu0 %v5837_v14 }
 0x241   : > { %5577 = vmatmul.mubr.bf16.vlgmr.msra.gmra.mxu1 %v1331_v52  ;;  %v5898_v52 = vld [vmem:[#allocation6 + $0x150] ss:$8 sps:$4 sm:$0xff]  }
 0x242   : > { %1948 = vmatmul.mubr.bf16.vlgmr.msra.gmra.mxu0 %v6846_v50  ;;  %2381 = vmatprep.mubr.bf16.mxu1 %v6548_v0  ;;  %v5855_v0 = vld [vmem:[#allocation6 + $0x14] ss:$8 sps:$4 sm:$0xff]  }
 0x243   : > { %2307 = vmatpush1.bf16.msra.mxu0 %v5835_v15  ;;  %2350 = vmatpush1.bf16.msra.mxu1 %v5886_v46  ;;  %v5879_v50 = vld [vmem:[#allocation6 + $0x94] ss:$8 sps:$4 sm:$0xff]  }
 0x244   : > { %2308 = vmatprep.subr.bf16.mxu0 %v5840_v18  ;;  %2351 = vmatprep.subr.bf16.mxu1 %v5894_v49  ;;  %v5915_v46 = vld [vmem:[#allocation9 + $0x4c] ss:$16 sps:$4 sm:$0xff]   ;;  %v5913_v49 = vld [vmem:[#allocation9 + $0x48] ss:$16 sps:$4 sm:$0xff]  }
 0x247   : > { %2309 = vmatpush1.bf16.msra.mxu0 %v5838_v21  ;;  %2352 = vmatpush1.bf16.msra.mxu1 %v5892_v48 }
 0x248   : > { %2310 = vmatprep.subr.bf16.mxu0 %v5843_v22  ;;  %2353 = vmatprep.subr.bf16.mxu1 %v5900_v53 }
 0x24b   : > { %2311 = vmatpush1.bf16.msra.mxu0 %v5841_v23  ;;  %2354 = vmatpush1.bf16.msra.mxu1 %v5898_v52  ;;  %v5921_v52 = vld [vmem:[#allocation9 + $0x2c] ss:$16 sps:$4 sm:$0xff]  }
 0x24c   : > { %2312 = vmatprep.subr.bf16.mxu0 %v5846_v17  ;;  %2355 = vmatprep.subr.bf16.mxu1 %v5906_v57  ;;  %v5919_v57 = vld [vmem:[#allocation9 + $0x28] ss:$16 sps:$4 sm:$0xff]  }
 0x24f   : > { %2313 = vmatpush1.bf16.msra.mxu0 %v5844_v24  ;;  %2356 = vmatpush1.bf16.msra.mxu1 %v5904_v56 }
 0x250   : > { %2314 = vmatprep.subr.bf16.mxu0 %v5849_v25  ;;  %2357 = vmatprep.subr.bf16.mxu1 %v5912_v59 }
 0x253   : > { %2315 = vmatpush1.bf16.msra.mxu0 %v5847_v26  ;;  %2358 = vmatpush1.bf16.msra.mxu1 %v5910_v60  ;;  %v5927_v60 = vld [vmem:[#allocation9 + $0xc] ss:$16 sps:$4 sm:$0xff]  }
 0x254   : > { %2316 = vmatprep.subr.bf16.mxu0 %v5852_v27  ;;  %2359 = vmatprep.subr.bf16.mxu1 %v5918_v61 }
 0x257   : > { %2317 = vmatpush1.bf16.msra.mxu0 %v5850_v28  ;;  %2360 = vmatpush1.bf16.msra.mxu1 %v5916_v62 }
 0x258   : > { %2318 = vmatprep.subr.bf16.mxu0 %v5855_v0  ;;  %2361 = vmatprep.subr.bf16.mxu1 %v5924_v63  ;;  %v5925_v63 = vld [vmem:[#allocation9 + $0x8] ss:$16 sps:$4 sm:$0xff]  }
 0x25b   : > { %2319 = vmatpush1.bf16.msra.mxu0 %v5853_v29  ;;  %2362 = vmatpush1.bf16.msra.mxu1 %v5922_v4 }
 0x25c   : > { %2320 = vmatprep.subr.bf16.mxu0 %v5858_v30  ;;  %2363 = vmatprep.subr.bf16.mxu1 %v5930_v5 }
 0x25f   : > { %2321 = vmatpush1.bf16.msra.mxu0 %v5856_v31  ;;  %2364 = vmatpush1.bf16.msra.mxu1 %v5928_v6  ;;  %v5933_v6 = vld [vmem:[#allocation9 + $0x1ec] ss:$16 sps:$4 sm:$0xff]  }
 0x260   : > { %2322 = vmatprep.subr.bf16.mxu0 %v5861_v32  ;;  %2844 = vmatprep.subr.bf16.mxu1 %v5936_v7 }
 0x263   : > { %2323 = vmatpush2.bf16.msra.mxu0 %v5859_v34 }
 0x264   : > { %2324 = vmatprep.subr.bf16.mxu0 %v5864_v35  ;;  %v5883_v35 = vld [vmem:[#allocation9 + $0xe8] ss:$16 sps:$4 sm:$0xff]  }
 0x267   : > { %2325 = vmatpush2.bf16.msra.mxu0 %v5862_v37 }
 0x268   : > { %2326 = vmatprep.subr.bf16.mxu0 %v5867_v38  ;;  %v5891_v38 = vld [vmem:[#allocation9 + $0xcc] ss:$16 sps:$4 sm:$0xff]  }
 0x26b   : > { %2327 = vmatpush2.bf16.msra.mxu0 %v5865_v39  ;;  %v5889_v39 = vld [vmem:[#allocation9 + $0xc8] ss:$16 sps:$4 sm:$0xff]  }
 0x26c   : > { %2328 = vmatprep.subr.bf16.mxu0 %v5870_v40  ;;  %v5897_v40 = vld [vmem:[#allocation9 + $0xac] ss:$16 sps:$4 sm:$0xff]  }
 0x26f   : > { %2329 = vmatpush2.bf16.msra.mxu0 %v5868_v41  ;;  %v5895_v41 = vld [vmem:[#allocation9 + $0xa8] ss:$16 sps:$4 sm:$0xff]  }
 0x270   : > { %2330 = vmatprep.subr.bf16.mxu0 %v5873_v42  ;;  %v5903_v42 = vld [vmem:[#allocation9 + $0x8c] ss:$16 sps:$4 sm:$0xff]  }
 0x273   : > { %2331 = vmatpush2.bf16.msra.mxu0 %v5871_v43  ;;  %v5901_v43 = vld [vmem:[#allocation9 + $0x88] ss:$16 sps:$4 sm:$0xff]  }
 0x274   : > { %2332 = vmatprep.subr.bf16.mxu0 %v5876_v44  ;;  %v5909_v44 = vld [vmem:[#allocation9 + $0x6c] ss:$16 sps:$4 sm:$0xff]  }
 0x277   : > { %2333 = vmatpush2.bf16.msra.mxu0 %v5874_v47 }
 0x278   : > { %2334 = vmatprep.subr.bf16.mxu0 %v5879_v50 }
 0x27b   : > { %2335 = vmatpush2.bf16.msra.mxu0 %v5877_v51  ;;  %v1441_v51 = vrot.slane %v1428_v8, %v6841_v19  ;;  %v5931_v8 = vld [vmem:[#allocation9 + $0x1e8] ss:$16 sps:$4 sm:$0xff]  }
 0x27c   : > { %2336 = vmatprep.subr.bf16.mxu0 %v5882_v54 }
 0x27f   : > { %2337 = vmatpush2.bf16.msra.mxu0 %v5880_v55 }
 0x280   : > { %2887 = vmatprep.subr.bf16.mxu0 %v5885_v58 }
 0x2e1   : > { %v1863_v11 = vpop.f32.mrf.mxu1 }
 0x2e2   : > { %v1906_v12 = vpop.f32.mrf.mxu0  ;;  %v1864_v18 = vadd.f32 %v1863_v11, %v1433_v10  ;;  %v5939_v11 = vld [vmem:[#allocation9 + $0x1cc] ss:$16 sps:$4 sm:$0xff]  }
 0x2e3   : > { %v1865_v13 = vpop.f32.mrf.mxu1 }
 0x2e4   : > { %v1866_v14 = vadd.f32 %v1865_v13, %v1437_v9  ;;  %v1908_v15 = vpop.f32.mrf.mxu0  ;;  %v1907_v28 = vadd.f32 %v1906_v12, %v1864_v18  ;;  %v5934_v12 = vld [vmem:[#allocation9 + $0xe0] ss:$16 sps:$4 sm:$0xff]   ;;  %v5945_v18 = vld [vmem:[#allocation9 + $0x1ac] ss:$16 sps:$4 sm:$0xff]  }
 0x2e5   : > { %v1867_v21 = vpop.f32.mrf.mxu1 }
 0x2e6   : > { %v1868_v22 = vadd.f32 %v1867_v21, %v1433_v10  ;;  %v1910_v23 = vpop.f32.mrf.mxu0  ;;  %v1909_v24 = vadd.f32 %v1908_v15, %v1866_v14  ;;  %v1997_v32 = vmax.f32 %v1907_v28, 0.0  ;;  %v5942_v14 = vld [vmem:[#allocation9 + $0xc4] ss:$16 sps:$4 sm:$0xff]   ;;  %v5937_v15 = vld [vmem:[#allocation9 + $0x1c8] ss:$16 sps:$4 sm:$0xff]  }
 0x2e7   : > { %v1869_v17 = vpop.f32.mrf.mxu1  ;;  %v5940_v21 = vld [vmem:[#allocation9 + $0xc0] ss:$16 sps:$4 sm:$0xff]  }
 0x2e8   : > { %v1911_v25 = vadd.f32 %v1910_v23, %v1868_v22  ;;  %v1870_v26 = vadd.f32 %v1869_v17, %v1437_v9  ;;  %v1912_v27 = vpop.f32.mrf.mxu0  ;;  %v1998_v30 = vmax.f32 %v1909_v24, 0.0  ;;  %v5948_v22 = vld [vmem:[#allocation9 + $0xa4] ss:$16 sps:$4 sm:$0xff]   ;;  %v5943_v23 = vld [vmem:[#allocation9 + $0x1a8] ss:$16 sps:$4 sm:$0xff]  }
 0x2e9   : > { %v5951_v17 = vld [vmem:[#allocation9 + $0x18c] ss:$16 sps:$4 sm:$0xff]   ;;  %v5946_v24 = vld [vmem:[#allocation9 + $0xa0] ss:$16 sps:$4 sm:$0xff]  }
 0x2ea   : > { %v1913_v0 = vadd.f32 %v1912_v27, %v1870_v26  ;;  %v2000_v29 = vmax.f32 %v1911_v25, 0.0  ;;  %v5954_v25 = vld [vmem:[#allocation9 + $0x84] ss:$16 sps:$4 sm:$0xff]   ;;  %v5949_v26 = vld [vmem:[#allocation9 + $0x188] ss:$16 sps:$4 sm:$0xff]  }
 0x2eb   : > { %v5957_v27 = vld [vmem:[#allocation9 + $0x16c] ss:$16 sps:$4 sm:$0xff]   ;;  %v5952_v28 = vld [vmem:[#allocation9 + $0x80] ss:$16 sps:$4 sm:$0xff]  }
 0x2ec   : > { %v2001_v31 = vmax.f32 %v1913_v0, 0.0  ;;  %v2003_v37 = vpack.c.bf16 %v2000_v29, %v1997_v32  ;;  %v5960_v0 = vld [vmem:[#allocation9 + $0x64] ss:$16 sps:$4 sm:$0xff]   ;;  %v5963_v29 = vld [vmem:[#allocation9 + $0x14c] ss:$16 sps:$4 sm:$0xff]  }
 0x2ed   : > { %v5961_v32 = vld [vmem:[#allocation9 + $0x148] ss:$16 sps:$4 sm:$0xff]  }
 0x2ee   : > { %v2004_v34 = vpack.c.bf16 %v2001_v31, %v1998_v30  ;;  %v5958_v30 = vld [vmem:[#allocation9 + $0x60] ss:$16 sps:$4 sm:$0xff]   ;;  %v5966_v31 = vld [vmem:[#allocation9 + $0x44] ss:$16 sps:$4 sm:$0xff]  }
 0x2f0   : > { %2338 = vmatprep.mubr.bf16.mxu0 %v2004_v34  ;;  %v5969_v34 = vld [vmem:[#allocation9 + $0x12c] ss:$16 sps:$4 sm:$0xff]  }
 0x2f1   : > { %2339 = vmatmul.mubr.bf16.vlgmr.msra.gmra.mxu0 %v2003_v37  ;;  %v5972_v37 = vld [vmem:[#allocation9 + $0x24] ss:$16 sps:$4 sm:$0xff]  }
 0x2f2   : > { %2888 = vmatpush1.bf16.msra.mxu0 %v5883_v35  ;;  %2919 = vmatprep.mubr.bf16.mxu0 %v6834_v36  ;;  %v5964_v35 = vld [vmem:[#allocation9 + $0x40] ss:$16 sps:$4 sm:$0xff]  }
 0x2f3   : > { %2889 = vmatprep.subr.bf16.mxu0 %v5891_v38  ;;  %v5967_v38 = vld [vmem:[#allocation9 + $0x128] ss:$16 sps:$4 sm:$0xff]  }
 0x2f6   : > { %2890 = vmatpush1.bf16.msra.mxu0 %v5889_v39  ;;  %v5975_v39 = vld [vmem:[#allocation9 + $0x10c] ss:$16 sps:$4 sm:$0xff]  }
 0x2f7   : > { %2891 = vmatprep.subr.bf16.mxu0 %v5897_v40  ;;  %v5970_v40 = vld [vmem:[#allocation9 + $0x20] ss:$16 sps:$4 sm:$0xff]  }
 0x2fa   : > { %2892 = vmatpush1.bf16.msra.mxu0 %v5895_v41  ;;  %v5978_v41 = vld [vmem:[#allocation9 + $0x4] ss:$16 sps:$4 sm:$0xff]  }
 0x2fb   : > { %2893 = vmatprep.subr.bf16.mxu0 %v5903_v42  ;;  %v5973_v42 = vld [vmem:[#allocation9 + $0x108] ss:$16 sps:$4 sm:$0xff]  }
 0x2fe   : > { %2894 = vmatpush1.bf16.msra.mxu0 %v5901_v43  ;;  %v5981_v43 = vld [vmem:[#allocation7 + $0xec] ss:$16 sps:$4 sm:$0xff]  }
 0x2ff   : > { %2895 = vmatprep.subr.bf16.mxu0 %v5909_v44  ;;  %v5976_v44 = vld [vmem:[#allocation9] ss:$16 sps:$4 sm:$0xff]  }
 0x301   : > { %v1990_v47 = vpop.f32.mrf.mxu1 }
 0x302   : > { %v5501_v48 = vpop.f32.mrf.mxu0  ;;  %2896 = vmatpush1.bf16.msra.mxu0 %v5907_v45  ;;  %v5984_v45 = vld [vmem:[#allocation9 + $0x1e4] ss:$16 sps:$4 sm:$0xff]  }
 0x303   : > { %v5578_v50 = vpop.f32.mrf.mxu1  ;;  %2897 = vmatprep.subr.bf16.mxu0 %v5915_v46  ;;  %v5979_v46 = vld [vmem:[#allocation7 + $0xe8] ss:$16 sps:$4 sm:$0xff]  }
 0x304   : > { %v5502_v53 = vpop.f32.mrf.mxu0  ;;  %v5985_v50 = vld [vmem:[#allocation7 + $0xc8] ss:$16 sps:$4 sm:$0xff]  }
 0x305   : > { %v5503_v54 = vadd.f32 %v5502_v53, %v5501_v48  ;;  %v1993_v55 = vpop.f32.mrf.mxu1  ;;  %v5982_v48 = vld [vmem:[#allocation9 + $0x1e0] ss:$16 sps:$4 sm:$0xff]   ;;  %v5996_v53 = vld [vmem:[#allocation9 + $0x1a4] ss:$16 sps:$4 sm:$0xff]  }
 0x306   : > { %v5504_v56 = vpop.f32.mrf.mxu0  ;;  %2898 = vmatpush1.bf16.msra.mxu0 %v5913_v49  ;;  %v5990_v49 = vld [vmem:[#allocation9 + $0x1c4] ss:$16 sps:$4 sm:$0xff]  }
 0x307   : > { %v1950_v58 = vadd.f32 %v5503_v54, %v1441_v51  ;;  %v5579_v59 = vpop.f32.mrf.mxu1  ;;  %2899 = vmatprep.subr.bf16.mxu0 %v5921_v52  ;;  %v5988_v52 = vld [vmem:[#allocation9 + $0x1c0] ss:$16 sps:$4 sm:$0xff]   ;;  %v5991_v54 = vld [vmem:[#allocation7 + $0xa8] ss:$16 sps:$4 sm:$0xff]  }
 0x308   : > { %v5505_v61 = vpop.f32.mrf.mxu0  ;;  %v6005_v59 = vld [vmem:[#allocation7 + $0x6c] ss:$16 sps:$4 sm:$0xff]  }
 0x309   : > { %v5506_v62 = vadd.f32 %v5505_v61, %v5504_v56  ;;  %v1991_v4 = vadd.f32 %v1990_v47, %v1950_v58  ;;  %v5987_v47 = vld [vmem:[#allocation7 + $0xcc] ss:$16 sps:$4 sm:$0xff]   ;;  %v5994_v56 = vld [vmem:[#allocation9 + $0x1a0] ss:$16 sps:$4 sm:$0xff]   ;;  %v5997_v58 = vld [vmem:[#allocation7 + $0x88] ss:$16 sps:$4 sm:$0xff]  }
 0x30a   : > { %2900 = vmatpush1.bf16.msra.mxu0 %v5919_v57  ;;  %v6002_v57 = vld [vmem:[#allocation9 + $0x184] ss:$16 sps:$4 sm:$0xff]  }
 0x30b   : > { %v1953_v5 = vadd.f32 %v5506_v62, %v1441_v51  ;;  %2901 = vmatprep.subr.bf16.mxu0 %v5927_v60  ;;  %v1999_v9 = vmax.f32 %v1991_v4, 0.0  ;;  %v5993_v51 = vld [vmem:[#allocation7 + $0xac] ss:$16 sps:$4 sm:$0xff]   ;;  %v6000_v60 = vld [vmem:[#allocation9 + $0x180] ss:$16 sps:$4 sm:$0xff]  }
 0x30c   : > { %v6008_v61 = vld [vmem:[#allocation9 + $0x164] ss:$16 sps:$4 sm:$0xff]   ;;  %v6003_v62 = vld [vmem:[#allocation7 + $0x68] ss:$16 sps:$4 sm:$0xff]   ;;  %v6006_v4 = vld [vmem:[#allocation9 + $0x160] ss:$16 sps:$4 sm:$0xff]  }
 0x30d   : > { %v1994_v7 = vadd.f32 %v1993_v55, %v1953_v5  ;;  %v5999_v55 = vld [vmem:[#allocation7 + $0x8c] ss:$16 sps:$4 sm:$0xff]   ;;  %v6014_v5 = vld [vmem:[#allocation9 + $0x144] ss:$16 sps:$4 sm:$0xff]  }
 0x30e   : > { %2902 = vmatpush1.bf16.msra.mxu0 %v5925_v63  ;;  %v6011_v63 = vld [vmem:[#allocation7 + $0x4c] ss:$16 sps:$4 sm:$0xff]  }
 0x30f   : > { %v2002_v10 = vmax.f32 %v1994_v7, 0.0  ;;  %2903 = vmatprep.subr.bf16.mxu0 %v5933_v6  ;;  %v6009_v6 = vld [vmem:[#allocation7 + $0x48] ss:$16 sps:$4 sm:$0xff]   ;;  %v6017_v7 = vld [vmem:[#allocation7 + $0x2c] ss:$16 sps:$4 sm:$0xff]  }
 0x311   : > { %v2005_v13 = vpack.c.bf16 %v2002_v10, %v1999_v9  ;;  %v6020_v9 = vld [vmem:[#allocation9 + $0x124] ss:$16 sps:$4 sm:$0xff]   ;;  %v6015_v10 = vld [vmem:[#allocation7 + $0x28] ss:$16 sps:$4 sm:$0xff]  }
 0x312   : > { %2904 = vmatpush2.bf16.msra.mxu0 %v5931_v8  ;;  %v6012_v8 = vld [vmem:[#allocation9 + $0x140] ss:$16 sps:$4 sm:$0xff]  }
 0x313   : > { %2382 = vmatmul.mubr.bf16.vlgmr.msra.gmra.mxu1 %v2005_v13  ;;  %2905 = vmatprep.subr.bf16.mxu0 %v5939_v11  ;;  %v6023_v11 = vld [vmem:[#allocation7 + $0xc] ss:$16 sps:$4 sm:$0xff]   ;;  %v6026_v13 = vld [vmem:[#allocation9 + $0x104] ss:$16 sps:$4 sm:$0xff]  }
 0x314   : > { %2845 = vmatpush1.bf16.msra.mxu1 %v5934_v12  ;;  %2876 = vmatprep.mubr.bf16.mxu1 %v6834_v36  ;;  %v5955_v36 = vld [vmem:[#allocation9 + $0x168] ss:$16 sps:$4 sm:$0xff]   ;;  %v6018_v12 = vld [vmem:[#allocation9 + $0x120] ss:$16 sps:$4 sm:$0xff]  }
 0x315   : > { %2846 = vmatprep.subr.bf16.mxu1 %v5942_v14  ;;  %v6021_v14 = vld [vmem:[#allocation7 + $0x8] ss:$16 sps:$4 sm:$0xff]  }
 0x316   : > { %2906 = vmatpush2.bf16.msra.mxu0 %v5937_v15  ;;  %v6029_v15 = vld [vmem:[#allocation7 + $0x1ec] ss:$16 sps:$4 sm:$0xff]  }
 0x317   : > { %2907 = vmatprep.subr.bf16.mxu0 %v5945_v18  ;;  %v6024_v18 = vld [vmem:[#allocation9 + $0x100] ss:$16 sps:$4 sm:$0xff]  }
 0x318   : > { %2847 = vmatpush1.bf16.msra.mxu1 %v5940_v21  ;;  %v6032_v21 = vld [vmem:[#allocation7 + $0xe4] ss:$16 sps:$4 sm:$0xff]  }
 0x319   : > { %2848 = vmatprep.subr.bf16.mxu1 %v5948_v22  ;;  %v6027_v22 = vld [vmem:[#allocation7 + $0x1e8] ss:$16 sps:$4 sm:$0xff]  }
 0x31a   : > { %2908 = vmatpush2.bf16.msra.mxu0 %v5943_v23  ;;  %v6035_v23 = vld [vmem:[#allocation7 + $0x1cc] ss:$16 sps:$4 sm:$0xff]  }
 0x31b   : > { %2909 = vmatprep.subr.bf16.mxu0 %v5951_v17  ;;  %v6030_v17 = vld [vmem:[#allocation7 + $0xe0] ss:$16 sps:$4 sm:$0xff]  }
 0x31c   : > { %2849 = vmatpush1.bf16.msra.mxu1 %v5946_v24  ;;  %v6038_v24 = vld [vmem:[#allocation7 + $0xc4] ss:$16 sps:$4 sm:$0xff]  }
 0x31d   : > { %2850 = vmatprep.subr.bf16.mxu1 %v5954_v25  ;;  %v6033_v25 = vld [vmem:[#allocation7 + $0x1c8] ss:$16 sps:$4 sm:$0xff]  }
 0x31e   : > { %2910 = vmatpush2.bf16.msra.mxu0 %v5949_v26  ;;  %v6041_v26 = vld [vmem:[#allocation7 + $0x1ac] ss:$16 sps:$4 sm:$0xff]  }
 0x31f   : > { %2911 = vmatprep.subr.bf16.mxu0 %v5957_v27  ;;  %v6036_v27 = vld [vmem:[#allocation7 + $0xc0] ss:$16 sps:$4 sm:$0xff]  }
 0x320   : > { %2851 = vmatpush1.bf16.msra.mxu1 %v5952_v28  ;;  %v6044_v28 = vld [vmem:[#allocation7 + $0xa4] ss:$16 sps:$4 sm:$0xff]  }
 0x321   : > { %2852 = vmatprep.subr.bf16.mxu1 %v5960_v0  ;;  %v6039_v0 = vld [vmem:[#allocation7 + $0x1a8] ss:$16 sps:$4 sm:$0xff]  }
 0x322   : > { %2912 = vmatpush2.bf16.msra.mxu0 %v5955_v36  ;;  %v6047_v36 = vld [vmem:[#allocation7 + $0x18c] ss:$16 sps:$4 sm:$0xff]  }
 0x323   : > { %2913 = vmatprep.subr.bf16.mxu0 %v5963_v29  ;;  %v6042_v29 = vld [vmem:[#allocation7 + $0xa0] ss:$16 sps:$4 sm:$0xff]  }
 0x324   : > { %2853 = vmatpush1.bf16.msra.mxu1 %v5958_v30  ;;  %v6050_v30 = vld [vmem:[#allocation7 + $0x84] ss:$16 sps:$4 sm:$0xff]  }
 0x325   : > { %2854 = vmatprep.subr.bf16.mxu1 %v5966_v31  ;;  %v6045_v31 = vld [vmem:[#allocation7 + $0x188] ss:$16 sps:$4 sm:$0xff]  }
 0x326   : > { %2914 = vmatpush2.bf16.msra.mxu0 %v5961_v32  ;;  %v6048_v32 = vld [vmem:[#allocation7 + $0x80] ss:$16 sps:$4 sm:$0xff]  }
 0x327   : > { %2915 = vmatprep.subr.bf16.mxu0 %v5969_v34  ;;  %v6056_v34 = vld [vmem:[#allocation7 + $0x64] ss:$16 sps:$4 sm:$0xff]  }
 0x328   : > { %2855 = vmatpush1.bf16.msra.mxu1 %v5964_v35  ;;  %v6059_v35 = vld [vmem:[#allocation7 + $0x14c] ss:$16 sps:$4 sm:$0xff]  }
 0x329   : > { %2856 = vmatprep.subr.bf16.mxu1 %v5972_v37  ;;  %v6054_v37 = vld [vmem:[#allocation7 + $0x60] ss:$16 sps:$4 sm:$0xff]  }
 0x32a   : > { %2916 = vmatpush2.bf16.msra.mxu0 %v5967_v38  ;;  %v6062_v38 = vld [vmem:[#allocation7 + $0x44] ss:$16 sps:$4 sm:$0xff]  }
 0x32b   : > { %2917 = vmatprep.subr.bf16.mxu0 %v5975_v39  ;;  %v6057_v39 = vld [vmem:[#allocation7 + $0x148] ss:$16 sps:$4 sm:$0xff]  }
 0x32c   : > { %2857 = vmatpush1.bf16.msra.mxu1 %v5970_v40  ;;  %v6065_v40 = vld [vmem:[#allocation7 + $0x12c] ss:$16 sps:$4 sm:$0xff]  }
 0x32d   : > { %2858 = vmatprep.subr.bf16.mxu1 %v5978_v41  ;;  %v6060_v41 = vld [vmem:[#allocation7 + $0x40] ss:$16 sps:$4 sm:$0xff]  }
 0x32e   : > { %2918 = vmatpush2.bf16.msra.mxu0 %v5973_v42  ;;  %v6068_v42 = vld [vmem:[#allocation7 + $0x24] ss:$16 sps:$4 sm:$0xff]  }
 0x32f   : > { %3293 = vmatprep.subr.bf16.mxu0 %v5981_v43  ;;  %v6063_v43 = vld [vmem:[#allocation7 + $0x128] ss:$16 sps:$4 sm:$0xff]  }
 0x330   : > { %2859 = vmatpush1.bf16.msra.mxu1 %v5976_v44  ;;  %v6071_v44 = vld [vmem:[#allocation7 + $0x10c] ss:$16 sps:$4 sm:$0xff]  }
 0x331   : > { %2920 = vmatmul.mubr.bf16.vlgmr.msra.gmra.mxu0 %v6831_v33  ;;  %2860 = vmatprep.subr.bf16.mxu1 %v5984_v45  ;;  %v6066_v45 = vld [vmem:[#allocation7 + $0x20] ss:$16 sps:$4 sm:$0xff]  }
 0x332   : > { %3294 = vmatpush1.bf16.msra.mxu0 %v5979_v46  ;;  %3325 = vmatprep.mubr.bf16.mxu0 %v6819_v16  ;;  %v6074_v46 = vld [vmem:[#allocation7 + $0x4] ss:$16 sps:$4 sm:$0xff]  }
 0x333   : > { %3295 = vmatprep.subr.bf16.mxu0 %v5987_v47  ;;  %v6069_v47 = vld [vmem:[#allocation7 + $0x108] ss:$16 sps:$4 sm:$0xff]  }
 0x334   : > { %2861 = vmatpush2.bf16.msra.mxu1 %v5982_v48  ;;  %v6072_v48 = vld [vmem:[#allocation7] ss:$16 sps:$4 sm:$0xff]  }
 0x335   : > { %2862 = vmatprep.subr.bf16.mxu1 %v5990_v49  ;;  %v6077_v49 = vld [vmem:[#allocation7 + $0x1e4] ss:$16 sps:$4 sm:$0xff]  }
 0x336   : > { %3296 = vmatpush1.bf16.msra.mxu0 %v5985_v50  ;;  %v6075_v50 = vld [vmem:[#allocation7 + $0x1e0] ss:$16 sps:$4 sm:$0xff]  }
 0x337   : > { %3297 = vmatprep.subr.bf16.mxu0 %v5993_v51  ;;  %v6080_v51 = vld [vmem:[#allocation7 + $0x1c4] ss:$16 sps:$4 sm:$0xff]  }
 0x338   : > { %2863 = vmatpush2.bf16.msra.mxu1 %v5988_v52  ;;  %v6078_v52 = vld [vmem:[#allocation7 + $0x1c0] ss:$16 sps:$4 sm:$0xff]  }
 0x339   : > { %2864 = vmatprep.subr.bf16.mxu1 %v5996_v53  ;;  %v6083_v53 = vld [vmem:[#allocation7 + $0x1a4] ss:$16 sps:$4 sm:$0xff]  }
 0x33a   : > { %3298 = vmatpush1.bf16.msra.mxu0 %v5991_v54  ;;  %v6099_v54 = vld [vmem:[#allocation10 + $0x2e0] ss:$16 sps:$4 sm:$0xff]  }
 0x33b   : > { %3299 = vmatprep.subr.bf16.mxu0 %v5999_v55  ;;  %v6101_v55 = vld [vmem:[#allocation10 + $0x2e4] ss:$16 sps:$4 sm:$0xff]  }
 0x33c   : > { %2865 = vmatpush2.bf16.msra.mxu1 %v5994_v56  ;;  %v6081_v56 = vld [vmem:[#allocation7 + $0x1a0] ss:$16 sps:$4 sm:$0xff]  }
 0x33d   : > { %2866 = vmatprep.subr.bf16.mxu1 %v6002_v57  ;;  %v6104_v57 = vld [vmem:[#allocation10 + $0x2c4] ss:$16 sps:$4 sm:$0xff]  }
 0x33e   : > { %3300 = vmatpush1.bf16.msra.mxu0 %v5997_v58  ;;  %v6086_v58 = vld [vmem:[#allocation7 + $0x184] ss:$16 sps:$4 sm:$0xff]  }
 0x33f   : > { %3301 = vmatprep.subr.bf16.mxu0 %v6005_v59  ;;  %v6102_v59 = vld [vmem:[#allocation10 + $0x2c0] ss:$16 sps:$4 sm:$0xff]  }
 0x340   : > { %2867 = vmatpush2.bf16.msra.mxu1 %v6000_v60  ;;  %v6107_v60 = vld [vmem:[#allocation10 + $0x2a4] ss:$16 sps:$4 sm:$0xff]  }
 0x341   : > { %2868 = vmatprep.subr.bf16.mxu1 %v6008_v61  ;;  %v6084_v61 = vld [vmem:[#allocation7 + $0x180] ss:$16 sps:$4 sm:$0xff]  }
 0x342   : > { %3302 = vmatpush1.bf16.msra.mxu0 %v6003_v62  ;;  %v6089_v62 = vld [vmem:[#allocation7 + $0x164] ss:$16 sps:$4 sm:$0xff]  }
 0x343   : > { %3303 = vmatprep.subr.bf16.mxu0 %v6011_v63  ;;  %v6105_v63 = vld [vmem:[#allocation10 + $0x2a0] ss:$16 sps:$4 sm:$0xff]  }
 0x344   : > { %2869 = vmatpush2.bf16.msra.mxu1 %v6006_v4  ;;  %v6110_v4 = vld [vmem:[#allocation10 + $0x284] ss:$16 sps:$4 sm:$0xff]  }
 0x345   : > { %2870 = vmatprep.subr.bf16.mxu1 %v6014_v5  ;;  %v6087_v5 = vld [vmem:[#allocation7 + $0x160] ss:$16 sps:$4 sm:$0xff]  }
 0x346   : > { %3304 = vmatpush1.bf16.msra.mxu0 %v6009_v6  ;;  %v6092_v6 = vld [vmem:[#allocation7 + $0x144] ss:$16 sps:$4 sm:$0xff]  }
 0x347   : > { %3305 = vmatprep.subr.bf16.mxu0 %v6017_v7  ;;  %v6108_v7 = vld [vmem:[#allocation10 + $0x280] ss:$16 sps:$4 sm:$0xff]  }
 0x348   : > { %2871 = vmatpush2.bf16.msra.mxu1 %v6012_v8  ;;  %v6113_v8 = vld [vmem:[#allocation10 + $0x264] ss:$16 sps:$4 sm:$0xff]  }
 0x349   : > { %2872 = vmatprep.subr.bf16.mxu1 %v6020_v9  ;;  %v6090_v9 = vld [vmem:[#allocation7 + $0x140] ss:$16 sps:$4 sm:$0xff]  }
 0x34a   : > { %3306 = vmatpush1.bf16.msra.mxu0 %v6015_v10  ;;  %v6095_v10 = vld [vmem:[#allocation7 + $0x124] ss:$16 sps:$4 sm:$0xff]  }
 0x34b   : > { %3307 = vmatprep.subr.bf16.mxu0 %v6023_v11  ;;  %v6111_v11 = vld [vmem:[#allocation10 + $0x260] ss:$16 sps:$4 sm:$0xff]  }
 0x34c   : > { %2873 = vmatpush2.bf16.msra.mxu1 %v6018_v12  ;;  %v6093_v12 = vld [vmem:[#allocation7 + $0x120] ss:$16 sps:$4 sm:$0xff]  }
 0x34d   : > { %2874 = vmatprep.subr.bf16.mxu1 %v6026_v13  ;;  %v6098_v13 = vld [vmem:[#allocation7 + $0x104] ss:$16 sps:$4 sm:$0xff]  }
 0x34e   : > { %3308 = vmatpush1.bf16.msra.mxu0 %v6021_v14  ;;  %v6096_v14 = vld [vmem:[#allocation7 + $0x100] ss:$16 sps:$4 sm:$0xff]  }
 0x34f   : > { %3309 = vmatprep.subr.bf16.mxu0 %v6029_v15  ;;  %v6116_v15 = vld [vmem:[#allocation10 + $0x244] ss:$16 sps:$4 sm:$0xff]  }
 0x350   : > { %2875 = vmatpush2.bf16.msra.mxu1 %v6024_v18  ;;  %v6114_v18 = vld [vmem:[#allocation10 + $0x240] ss:$16 sps:$4 sm:$0xff]  }
 0x351   : > { %3250 = vmatprep.subr.bf16.mxu1 %v6032_v21  ;;  %v6119_v21 = vld [vmem:[#allocation10 + $0x224] ss:$16 sps:$4 sm:$0xff]  }
 0x352   : > { %3310 = vmatpush2.bf16.msra.mxu0 %v6027_v22  ;;  %v6117_v22 = vld [vmem:[#allocation10 + $0x220] ss:$16 sps:$4 sm:$0xff]  }
 0x353   : > { %2877 = vmatmul.mubr.bf16.vlgmr.msra.gmra.mxu1 %v6831_v33  ;;  %3311 = vmatprep.subr.bf16.mxu0 %v6035_v23  ;;  %v6053_v33 = vld [vmem:[#allocation7 + $0x16c] ss:$16 sps:$4 sm:$0xff]   ;;  %v6122_v23 = vld [vmem:[#allocation10 + $0x204] ss:$16 sps:$4 sm:$0xff]  }
 0x354   : > { %3251 = vmatpush1.bf16.msra.mxu1 %v6030_v17  ;;  %3282 = vmatprep.mubr.bf16.mxu1 %v6819_v16  ;;  %v6051_v16 = vld [vmem:[#allocation7 + $0x168] ss:$16 sps:$4 sm:$0xff]   ;;  %v6120_v17 = vld [vmem:[#allocation10 + $0x200] ss:$16 sps:$4 sm:$0xff]  }
 0x355   : > { %3252 = vmatprep.subr.bf16.mxu1 %v6038_v24  ;;  %v6126_v24 = vld [vmem:[#allocation10 + $0xe0] ss:$16 sps:$4 sm:$0xff]  }
 0x356   : > { %3312 = vmatpush2.bf16.msra.mxu0 %v6033_v25  ;;  %v6128_v25 = vld [vmem:[#allocation10 + $0xe4] ss:$16 sps:$4 sm:$0xff]  }
 0x357   : > { %3313 = vmatprep.subr.bf16.mxu0 %v6041_v26  ;;  %v6125_v26 = vld [vmem:[#allocation10 + $0x3e4] ss:$16 sps:$4 sm:$0xff]  }
 0x358   : > { %3253 = vmatpush1.bf16.msra.mxu1 %v6036_v27  ;;  %v6134_v27 = vld [vmem:[#allocation10 + $0xc4] ss:$16 sps:$4 sm:$0xff]  }
 0x359   : > { %3254 = vmatprep.subr.bf16.mxu1 %v6044_v28  ;;  %v6132_v28 = vld [vmem:[#allocation10 + $0xc0] ss:$16 sps:$4 sm:$0xff]  }
 0x35a   : > { %3314 = vmatpush2.bf16.msra.mxu0 %v6039_v0  ;;  %v6140_v0 = vld [vmem:[#allocation10 + $0xa4] ss:$16 sps:$4 sm:$0xff]  }
 0x35b   : > { %3315 = vmatprep.subr.bf16.mxu0 %v6047_v36  ;;  %v6131_v36 = vld [vmem:[#allocation10 + $0x3c4] ss:$16 sps:$4 sm:$0xff]  }
 0x35c   : > { %3255 = vmatpush1.bf16.msra.mxu1 %v6042_v29  ;;  %v6138_v29 = vld [vmem:[#allocation10 + $0xa0] ss:$16 sps:$4 sm:$0xff]  }
 0x35d   : > { %3256 = vmatprep.subr.bf16.mxu1 %v6050_v30  ;;  %v6129_v30 = vld [vmem:[#allocation10 + $0x3c0] ss:$16 sps:$4 sm:$0xff]  }
 0x35e   : > { %3316 = vmatpush2.bf16.msra.mxu0 %v6045_v31  ;;  %v6146_v31 = vld [vmem:[#allocation10 + $0x84] ss:$16 sps:$4 sm:$0xff]  }
 0x35f   : > { %3317 = vmatprep.subr.bf16.mxu0 %v6053_v33  ;;  %v6137_v33 = vld [vmem:[#allocation10 + $0x3a4] ss:$16 sps:$4 sm:$0xff]  }
 0x360   : > { %3257 = vmatpush1.bf16.msra.mxu1 %v6048_v32  ;;  %v6144_v32 = vld [vmem:[#allocation10 + $0x80] ss:$16 sps:$4 sm:$0xff]  }
 0x361   : > { %3258 = vmatprep.subr.bf16.mxu1 %v6056_v34  ;;  %v6135_v34 = vld [vmem:[#allocation10 + $0x3a0] ss:$16 sps:$4 sm:$0xff]  }
 0x362   : > { %3318 = vmatpush2.bf16.msra.mxu0 %v6051_v16  ;;  %v6143_v16 = vld [vmem:[#allocation10 + $0x384] ss:$16 sps:$4 sm:$0xff]  }
 0x363   : > { %3319 = vmatprep.subr.bf16.mxu0 %v6059_v35  ;;  %v6141_v35 = vld [vmem:[#allocation10 + $0x380] ss:$16 sps:$4 sm:$0xff]  }
 0x364   : > { %3259 = vmatpush1.bf16.msra.mxu1 %v6054_v37  ;;  %v6149_v37 = vld [vmem:[#allocation10 + $0x364] ss:$16 sps:$4 sm:$0xff]  }
 0x365   : > { %3260 = vmatprep.subr.bf16.mxu1 %v6062_v38  ;;  %v6147_v38 = vld [vmem:[#allocation10 + $0x360] ss:$16 sps:$4 sm:$0xff]  }
 0x366   : > { %3320 = vmatpush2.bf16.msra.mxu0 %v6057_v39  ;;  %v6152_v39 = vld [vmem:[#allocation10 + $0x64] ss:$16 sps:$4 sm:$0xff]  }
 0x367   : > { %3321 = vmatprep.subr.bf16.mxu0 %v6065_v40  ;;  %v6150_v40 = vld [vmem:[#allocation10 + $0x60] ss:$16 sps:$4 sm:$0xff]  }
 0x368   : > { %3261 = vmatpush1.bf16.msra.mxu1 %v6060_v41  ;;  %v6155_v41 = vld [vmem:[#allocation10 + $0x344] ss:$16 sps:$4 sm:$0xff]  }
 0x369   : > { %3262 = vmatprep.subr.bf16.mxu1 %v6068_v42  ;;  %v6153_v42 = vld [vmem:[#allocation10 + $0x340] ss:$16 sps:$4 sm:$0xff]  }
 0x36a   : > { %3322 = vmatpush2.bf16.msra.mxu0 %v6063_v43  ;;  %v6158_v43 = vld [vmem:[#allocation10 + $0x44] ss:$16 sps:$4 sm:$0xff]  }
 0x36b   : > { %3323 = vmatprep.subr.bf16.mxu0 %v6071_v44  ;;  %v6156_v44 = vld [vmem:[#allocation10 + $0x40] ss:$16 sps:$4 sm:$0xff]  }
 0x36c   : > { %3263 = vmatpush1.bf16.msra.mxu1 %v6066_v45  ;;  %v6161_v45 = vld [vmem:[#allocation10 + $0x324] ss:$16 sps:$4 sm:$0xff]  }
 0x36d   : > { %3264 = vmatprep.subr.bf16.mxu1 %v6074_v46  ;;  %v6159_v46 = vld [vmem:[#allocation10 + $0x320] ss:$16 sps:$4 sm:$0xff]  }
 0x36e   : > { %3324 = vmatpush2.bf16.msra.mxu0 %v6069_v47  ;;  %v6164_v47 = vld [vmem:[#allocation10 + $0x24] ss:$16 sps:$4 sm:$0xff]  }
 0x36f   : > { %4211 = vmatprep.subr.bf16.mxu0 %v6101_v55  ;;  %v6176_v55 = vld [vmem:[#allocation10 + $0x1e4] ss:$16 sps:$4 sm:$0xff]  }
 0x370   : > { %3265 = vmatpush1.bf16.msra.mxu1 %v6072_v48  ;;  %v6162_v48 = vld [vmem:[#allocation10 + $0x20] ss:$16 sps:$4 sm:$0xff]  }
 0x371   : > { %3326 = vmatmul.mubr.bf16.vlgmr.msra.gmra.mxu0 %v6821_v20  ;;  %3266 = vmatprep.subr.bf16.mxu1 %v6077_v49  ;;  %v6167_v49 = vld [vmem:[#allocation10 + $0x304] ss:$16 sps:$4 sm:$0xff]  }
 0x372   : > { %4212 = vmatpush1.bf16.msra.mxu0 %v6099_v54  ;;  %v6174_v54 = vld [vmem:[#allocation10 + $0x1e0] ss:$16 sps:$4 sm:$0xff]  }
 0x373   : > { %4213 = vmatprep.subr.bf16.mxu0 %v6104_v57  ;;  %v6182_v57 = vld [vmem:[#allocation10 + $0x1c4] ss:$16 sps:$4 sm:$0xff]  }
 0x374   : > { %3267 = vmatpush2.bf16.msra.mxu1 %v6075_v50  ;;  %v6165_v50 = vld [vmem:[#allocation10 + $0x300] ss:$16 sps:$4 sm:$0xff]  }
 0x375   : > { %3268 = vmatprep.subr.bf16.mxu1 %v6080_v51  ;;  %v6168_v51 = vld [vmem:[#allocation10] ss:$16 sps:$4 sm:$0xff]  }
 0x376   : > { %4214 = vmatpush1.bf16.msra.mxu0 %v6102_v59  ;;  %v6188_v59 = vld [vmem:[#allocation10 + $0x1a4] ss:$16 sps:$4 sm:$0xff]  }
 0x377   : > { %4215 = vmatprep.subr.bf16.mxu0 %v6107_v60 }
 0x378   : > { %3269 = vmatpush2.bf16.msra.mxu1 %v6078_v52  ;;  %v6170_v52 = vld [vmem:[#allocation10 + $0x4] ss:$16 sps:$4 sm:$0xff]  }
 0x379   : > { %3270 = vmatprep.subr.bf16.mxu1 %v6083_v53  ;;  %v6173_v53 = vld [vmem:[#allocation10 + $0x2ec] ss:$16 sps:$4 sm:$0xff]  }
 0x37a   : > { %4216 = vmatpush1.bf16.msra.mxu0 %v6105_v63  ;;  %v6194_v63 = vld [vmem:[#allocation10 + $0x184] ss:$16 sps:$4 sm:$0xff]  }
 0x37b   : > { %4217 = vmatprep.subr.bf16.mxu0 %v6110_v4 }
 0x37c   : > { %3271 = vmatpush2.bf16.msra.mxu1 %v6081_v56  ;;  %v6180_v56 = vld [vmem:[#allocation10 + $0x1c0] ss:$16 sps:$4 sm:$0xff]  }
 0x37d   : > { %3272 = vmatprep.subr.bf16.mxu1 %v6086_v58  ;;  %v6186_v58 = vld [vmem:[#allocation10 + $0x1a0] ss:$16 sps:$4 sm:$0xff]  }
 0x37e   : > { %4218 = vmatpush1.bf16.msra.mxu0 %v6108_v7  ;;  %v6200_v7 = vld [vmem:[#allocation10 + $0x164] ss:$16 sps:$4 sm:$0xff]  }
 0x37f   : > { %4219 = vmatprep.subr.bf16.mxu0 %v6113_v8 }
 0x380   : > { %3273 = vmatpush2.bf16.msra.mxu1 %v6084_v61  ;;  %v2054_v61 = vld [vmem:[%s6926_s9] sm:$0x3] }
 0x381   : > { %3274 = vmatprep.subr.bf16.mxu1 %v6089_v62  ;;  %v6192_v62 = vld [vmem:[#allocation10 + $0x180] ss:$16 sps:$4 sm:$0xff]   ;;  %v2063_v8 = vrot.slane %v2054_v61, %v6812_v3 }
 0x382   : > { %4220 = vmatpush1.bf16.msra.mxu0 %v6111_v11 }
 0x383   : > { %4221 = vmatprep.subr.bf16.mxu0 %v6116_v15 }
 0x384   : > { %3275 = vmatpush2.bf16.msra.mxu1 %v6087_v5  ;;  %v2059_v5 = vrot.slane %v2054_v61, %v6809_v2  ;;  %v6171_v61 = vld [vmem:[#allocation10 + $0x2e8] ss:$16 sps:$4 sm:$0xff]  }
 0x385   : > { %3276 = vmatprep.subr.bf16.mxu1 %v6092_v6  ;;  %v6198_v6 = vld [vmem:[#allocation10 + $0x160] ss:$16 sps:$4 sm:$0xff]  }
 0x386   : > { %4222 = vmatpush1.bf16.msra.mxu0 %v6114_v18 }
 0x387   : > { %4223 = vmatprep.subr.bf16.mxu0 %v6119_v21  ;;  %v6204_v21 = vld [vmem:[#allocation10 + $0x140] ss:$16 sps:$4 sm:$0xff]  }
 0x388   : > { %3277 = vmatpush2.bf16.msra.mxu1 %v6090_v9 }
 0x389   : > { %3278 = vmatprep.subr.bf16.mxu1 %v6095_v10 }
 0x38a   : > { %4224 = vmatpush1.bf16.msra.mxu0 %v6117_v22 }
 0x38b   : > { %4225 = vmatprep.subr.bf16.mxu0 %v6122_v23 }
 0x38c   : > { %3279 = vmatpush2.bf16.msra.mxu1 %v6093_v12 }
 0x38d   : > { %3280 = vmatprep.subr.bf16.mxu1 %v6098_v13 }
 0x38e   : > { %4226 = vmatpush1.bf16.msra.mxu0 %v6120_v17 }
 0x38f   : > { %4227 = vmatprep.subr.bf16.mxu0 %v6125_v26 }
 0x390   : > { %3281 = vmatpush2.bf16.msra.mxu1 %v6096_v14  ;;  %v6206_v14 = vld [vmem:[#allocation10 + $0x144] ss:$16 sps:$4 sm:$0xff]  }
 0x391   : > { %4168 = vmatprep.subr.bf16.mxu1 %v6128_v25 }
 0x393   : > { %3283 = vmatmul.mubr.bf16.vlgmr.msra.gmra.mxu1 %v6821_v20  ;;  %v6123_v20 = vld [vmem:[#allocation10 + $0x3e0] ss:$16 sps:$4 sm:$0xff]  }
 0x394   : > { %4169 = vmatpush1.bf16.msra.mxu1 %v6126_v24  ;;  %4228 = vmatpush2.bf16.msra.mxu0 %v6123_v20 }
 0x395   : > { %4170 = vmatprep.subr.bf16.mxu1 %v6134_v27  ;;  %4229 = vmatprep.subr.bf16.mxu0 %v6131_v36 }
 0x398   : > { %4171 = vmatpush1.bf16.msra.mxu1 %v6132_v28  ;;  %4230 = vmatpush2.bf16.msra.mxu0 %v6129_v30  ;;  %v6212_v28 = vld [vmem:[#allocation10 + $0x124] ss:$16 sps:$4 sm:$0xff]  }
 0x399   : > { %4172 = vmatprep.subr.bf16.mxu1 %v6140_v0  ;;  %4231 = vmatprep.subr.bf16.mxu0 %v6137_v33  ;;  %v6210_v0 = vld [vmem:[#allocation10 + $0x120] ss:$16 sps:$4 sm:$0xff]   ;;  %v6218_v33 = vld [vmem:[#allocation10 + $0x104] ss:$16 sps:$4 sm:$0xff]  }
 0x39c   : > { %4173 = vmatpush1.bf16.msra.mxu1 %v6138_v29  ;;  %4232 = vmatpush2.bf16.msra.mxu0 %v6135_v34 }
 0x39d   : > { %4174 = vmatprep.subr.bf16.mxu1 %v6146_v31  ;;  %4233 = vmatprep.subr.bf16.mxu0 %v6143_v16  ;;  %v6224_v16 = vld [vmem:[#allocation10 + $0xec] ss:$16 sps:$4 sm:$0xff]  }
 0x3a0   : > { %4175 = vmatpush1.bf16.msra.mxu1 %v6144_v32  ;;  %4234 = vmatpush2.bf16.msra.mxu0 %v6141_v35  ;;  %v6216_v32 = vld [vmem:[#allocation10 + $0x100] ss:$16 sps:$4 sm:$0xff]  }
 0x3a1   : > { %4235 = vmatprep.subr.bf16.mxu0 %v6149_v37  ;;  %4176 = vmatprep.subr.bf16.mxu1 %v6152_v39 }
 0x3a4   : > { %4236 = vmatpush2.bf16.msra.mxu0 %v6147_v38  ;;  %4177 = vmatpush1.bf16.msra.mxu1 %v6150_v40  ;;  %v3352_v40 = vsub.s32 3, %v6806_v1 }
 0x3a5   : > { %4237 = vmatprep.subr.bf16.mxu0 %v6155_v41  ;;  %4178 = vmatprep.subr.bf16.mxu1 %v6158_v43 }
 0x3a8   : > { %4238 = vmatpush2.bf16.msra.mxu0 %v6153_v42  ;;  %4179 = vmatpush1.bf16.msra.mxu1 %v6156_v44  ;;  %v3336_v42 = vld [vmem:[%s6929_s12] sm:$0xf] }
 0x3a9   : > { %4239 = vmatprep.subr.bf16.mxu0 %v6161_v45  ;;  %4180 = vmatprep.subr.bf16.mxu1 %v6164_v47  ;;  %v3353_v45 = vrot.slane %v3336_v42, %v3352_v40  ;;  %v3349_v47 = vrot.slane %v3336_v42, %v6841_v19 }
 0x3ac   : > { %4240 = vmatpush2.bf16.msra.mxu0 %v6159_v46  ;;  %4181 = vmatpush1.bf16.msra.mxu1 %v6162_v48 }
 0x3ad   : > { %4241 = vmatprep.subr.bf16.mxu0 %v6167_v49  ;;  %4182 = vmatprep.subr.bf16.mxu1 %v6170_v52 }
 0x3b0   : > { %4242 = vmatpush2.bf16.msra.mxu0 %v6165_v50  ;;  %4183 = vmatpush1.bf16.msra.mxu1 %v6168_v51 }
 0x3b1   : > { %4297 = vmatprep.subr.bf16.mxu0 %v6173_v53  ;;  %4184 = vmatprep.subr.bf16.mxu1 %v6176_v55  ;;  %v2340_v60 = vpop.f32.mrf.mxu0 }
 0x3b2   : > { %v2341_v10 = vadd.f32 %v2340_v60, %v2059_v5 }
 0x3b3   : > { %v2342_v4 = vpop.f32.mrf.mxu0 }
 0x3b4   : > { %4185 = vmatpush2.bf16.msra.mxu1 %v6174_v54  ;;  %v2343_v12 = vadd.f32 %v2342_v4, %v2063_v8  ;;  %v6177_v4 = vld [vmem:[#allocation10 + $0x2c8] ss:$16 sps:$4 sm:$0xff]  }
 0x3b5   : > { %4186 = vmatprep.subr.bf16.mxu1 %v6182_v57  ;;  %v2344_v9 = vpop.f32.mrf.mxu0 }
 0x3b6   : > { %v2345_v22 = vadd.f32 %v2344_v9, %v2059_v5  ;;  %v6185_v5 = vld [vmem:[#allocation10 + $0x2ac] ss:$16 sps:$4 sm:$0xff]  }
 0x3b7   : > { %v2346_v15 = vpop.f32.mrf.mxu0 }
 0x3b8   : > { %4187 = vmatpush2.bf16.msra.mxu1 %v6180_v56  ;;  %v2347_v24 = vadd.f32 %v2346_v15, %v2063_v8  ;;  %v6191_v8 = vld [vmem:[#allocation10 + $0x28c] ss:$16 sps:$4 sm:$0xff]  }
 0x3b9   : > { %4188 = vmatprep.subr.bf16.mxu1 %v6188_v59 }
 0x3bc   : > { %4189 = vmatpush2.bf16.msra.mxu1 %v6186_v58 }
 0x3bd   : > { %4190 = vmatprep.subr.bf16.mxu1 %v6194_v63  ;;  %v6179_v63 = vld [vmem:[#allocation10 + $0x2cc] ss:$16 sps:$4 sm:$0xff]  }
 0x3c0   : > { %4191 = vmatpush2.bf16.msra.mxu1 %v6192_v62 }
 0x3c1   : > { %4192 = vmatprep.subr.bf16.mxu1 %v6200_v7  ;;  %v6183_v7 = vld [vmem:[#allocation10 + $0x2a8] ss:$16 sps:$4 sm:$0xff]  }
 0x3c4   : > { %4193 = vmatpush2.bf16.msra.mxu1 %v6198_v6 }
 0x3c5   : > { %4194 = vmatprep.subr.bf16.mxu1 %v6206_v14  ;;  %v6203_v14 = vld [vmem:[#allocation10 + $0x24c] ss:$16 sps:$4 sm:$0xff]  }
 0x3c8   : > { %4195 = vmatpush2.bf16.msra.mxu1 %v6204_v21 }
 0x3c9   : > { %4196 = vmatprep.subr.bf16.mxu1 %v6212_v28 }
 0x3cc   : > { %4197 = vmatpush2.bf16.msra.mxu1 %v6210_v0 }
 0x3cd   : > { %4198 = vmatprep.subr.bf16.mxu1 %v6218_v33  ;;  %v6213_v33 = vld [vmem:[#allocation10 + $0x208] ss:$16 sps:$4 sm:$0xff]  }
 0x3d0   : > { %4199 = vmatpush2.bf16.msra.mxu1 %v6216_v32 }
 0x3d1   : > { %4254 = vmatprep.subr.bf16.mxu1 %v6224_v16 }
 0x3d3   : > { %v2383_v11 = vpop.f32.mrf.mxu1 }
 0x3d4   : > { %v2384_v13 = vadd.f32 %v2383_v11, %v2341_v10  ;;  %v6189_v10 = vld [vmem:[#allocation10 + $0x288] ss:$16 sps:$4 sm:$0xff]   ;;  %v6197_v11 = vld [vmem:[#allocation10 + $0x26c] ss:$16 sps:$4 sm:$0xff]  }
 0x3d5   : > { %v2385_v18 = vpop.f32.mrf.mxu1 }
 0x3d6   : > { %v2386_v23 = vadd.f32 %v2385_v18, %v2343_v12  ;;  %v2392_v25 = vmax.f32 %v2384_v13, 0.0  ;;  %v6195_v13 = vld [vmem:[#allocation10 + $0x268] ss:$16 sps:$4 sm:$0xff]  }
 0x3d7   : > { %v2387_v17 = vpop.f32.mrf.mxu1  ;;  %v6201_v18 = vld [vmem:[#allocation10 + $0x248] ss:$16 sps:$4 sm:$0xff]  }
 0x3d8   : > { %v2393_v26 = vmax.f32 %v2386_v23, 0.0  ;;  %v2388_v27 = vadd.f32 %v2387_v17, %v2345_v22  ;;  %v6209_v22 = vld [vmem:[#allocation10 + $0x22c] ss:$16 sps:$4 sm:$0xff]  }
 0x3d9   : > { %v2389_v20 = vpop.f32.mrf.mxu1 }
 0x3da   : > { %v5454_v36 = vpack.c.bf16 %v2393_v26, %v2392_v25  ;;  %v2390_v29 = vadd.f32 %v2389_v20, %v2347_v24  ;;  %v2394_v30 = vmax.f32 %v2388_v27, 0.0  ;;  %v3345_v24 = vrot.slane %v3336_v42, %v6812_v3  ;;  %v6207_v25 = vld [vmem:[#allocation10 + $0x228] ss:$16 sps:$4 sm:$0xff]   ;;  %v6215_v20 = vld [vmem:[#allocation10 + $0x20c] ss:$16 sps:$4 sm:$0xff]  }
 0x3db   : > { %v3341_v27 = vrot.slane %v3336_v42, %v6809_v2  ;;  %v6227_v42 = vld [vmem:[#allocation10 + $0x3cc] ss:$16 sps:$4 sm:$0xff]  }
 0x3dc   : > { %4723 = vst [vmem:[%s752_s23] sm:$0xff] %v5454_v36  ;;  %v2395_v31 = vmax.f32 %v2390_v29, 0.0 }
 0x3de   : > { %v5455_v34 = vpack.c.bf16 %v2395_v31, %v2394_v30 }
 0x3e0   : > { %4724 = vst [vmem:[%s752_s23 + $0x8] sm:$0xff] %v5455_v34  ;;  %v6221_v34 = vld [vmem:[#allocation10 + $0x3ec] ss:$16 sps:$4 sm:$0xff]  }
 0x3f1   : > { %v2921_v35 = vpop.f32.mrf.mxu0 }
 0x3f3   : > { %v2923_v37 = vpop.f32.mrf.mxu0 }
 0x3f5   : > { %v2925_v38 = vpop.f32.mrf.mxu0 }
 0x3f7   : > { %v2927_v39 = vpop.f32.mrf.mxu0 }
 0x413   : > { %v2878_v6 = vpop.f32.mrf.mxu1 }
 0x415   : > { %v2880_v9 = vpop.f32.mrf.mxu1 }
 0x417   : > { %v2882_v12 = vpop.f32.mrf.mxu1 }
 0x419   : > { %v2884_v15 = vpop.f32.mrf.mxu1 }
 0x431   : > { %v3327_v41 = vpop.f32.mrf.mxu0 }
 0x432   : > { %v3328_v46 = vadd.f32 %v3327_v41, %v2921_v35 }
 0x433   : > { %v3329_v43 = vpop.f32.mrf.mxu0 }
 0x434   : > { %v3330_v44 = vadd.f32 %v3329_v43, %v2923_v37  ;;  %v3360_v54 = vadd.f32 %v3349_v47, %v3328_v46  ;;  %v6230_v46 = vld [vmem:[#allocation10 + $0xcc] ss:$16 sps:$4 sm:$0xff]  }
 0x435   : > { %v3331_v48 = vpop.f32.mrf.mxu0 }
 0x436   : > { %v3332_v49 = vadd.f32 %v3331_v48, %v2925_v38  ;;  %v3361_v51 = vadd.f32 %v3353_v45, %v3330_v44  ;;  %v3368_v59 = vmax.f32 %v3360_v54, 0.0  ;;  %v6222_v44 = vld [vmem:[#allocation10 + $0xe8] ss:$16 sps:$4 sm:$0xff]   ;;  %v6233_v48 = vld [vmem:[#allocation10 + $0x3ac] ss:$16 sps:$4 sm:$0xff]  }
 0x437   : > { %v3333_v50 = vpop.f32.mrf.mxu0  ;;  %v6242_v54 = vld [vmem:[#allocation10 + $0x8c] ss:$16 sps:$4 sm:$0xff]  }
 0x438   : > { %v3364_v52 = vadd.f32 %v3349_v47, %v3332_v49  ;;  %v3334_v53 = vadd.f32 %v3333_v50, %v2927_v39  ;;  %v3369_v57 = vmax.f32 %v3361_v51, 0.0  ;;  %v6219_v39 = vld [vmem:[#allocation10 + $0x3e8] ss:$16 sps:$4 sm:$0xff]   ;;  %v6236_v50 = vld [vmem:[#allocation10 + $0xac] ss:$16 sps:$4 sm:$0xff]  }
 0x439   : > { %v6225_v47 = vld [vmem:[#allocation10 + $0x3c8] ss:$16 sps:$4 sm:$0xff]  }
 0x43a   : > { %v3365_v55 = vadd.f32 %v3353_v45, %v3334_v53  ;;  %v3372_v56 = vmax.f32 %v3364_v52, 0.0  ;;  %v6228_v49 = vld [vmem:[#allocation10 + $0xc8] ss:$16 sps:$4 sm:$0xff]   ;;  %v6239_v52 = vld [vmem:[#allocation10 + $0x38c] ss:$16 sps:$4 sm:$0xff]  }
 0x43b   : > { %v6231_v51 = vld [vmem:[#allocation10 + $0x3a8] ss:$16 sps:$4 sm:$0xff]  }
 0x43c   : > { %v3373_v58 = vmax.f32 %v3365_v55, 0.0  ;;  %v6889_v62 = vpack.c.bf16 %v3372_v56, %v3368_v59  ;;  %v6234_v53 = vld [vmem:[#allocation10 + $0xa8] ss:$16 sps:$4 sm:$0xff]   ;;  %v6245_v56 = vld [vmem:[#allocation10 + $0x36c] ss:$16 sps:$4 sm:$0xff]  }
 0x43d   : > { %v6237_v55 = vld [vmem:[#allocation10 + $0x388] ss:$16 sps:$4 sm:$0xff]  }
 0x43e   : > { %v3377_v60 = vpack.c.bf16 %v3373_v58, %v3369_v57  ;;  %v6240_v57 = vld [vmem:[#allocation10 + $0x88] ss:$16 sps:$4 sm:$0xff]   ;;  %v6248_v58 = vld [vmem:[#allocation10 + $0x6c] ss:$16 sps:$4 sm:$0xff]  }
 0x43f   : > { %v6243_v59 = vld [vmem:[#allocation10 + $0x368] ss:$16 sps:$4 sm:$0xff]  }
 0x440   : > { %4243 = vmatprep.mubr.bf16.mxu0 %v3377_v60 }
 0x441   : > { %4244 = vmatmul.mubr.bf16.vlgmr.msra.gmra.mxu0 %v6889_v62 }
 0x442   : > { %4298 = vmatpush1.bf16.msra.mxu0 %v6171_v61  ;;  %4329 = vmatprep.mubr.bf16.mxu0 %v3377_v60  ;;  %v6251_v60 = vld [vmem:[#allocation10 + $0x34c] ss:$16 sps:$4 sm:$0xff]   ;;  %v6246_v61 = vld [vmem:[#allocation10 + $0x68] ss:$16 sps:$4 sm:$0xff]  }
 0x443   : > { %4299 = vmatprep.subr.bf16.mxu0 %v6179_v63  ;;  %v6254_v63 = vld [vmem:[#allocation10 + $0x4c] ss:$16 sps:$4 sm:$0xff]  }
 0x446   : > { %4300 = vmatpush1.bf16.msra.mxu0 %v6177_v4  ;;  %v6249_v4 = vld [vmem:[#allocation10 + $0x348] ss:$16 sps:$4 sm:$0xff]  }
 0x447   : > { %4301 = vmatprep.subr.bf16.mxu0 %v6185_v5  ;;  %v6257_v5 = vld [vmem:[#allocation10 + $0x32c] ss:$16 sps:$4 sm:$0xff]  }
 0x44a   : > { %4302 = vmatpush1.bf16.msra.mxu0 %v6183_v7  ;;  %v6260_v7 = vld [vmem:[#allocation10 + $0x2c] ss:$16 sps:$4 sm:$0xff]  }
 0x44b   : > { %4303 = vmatprep.subr.bf16.mxu0 %v6191_v8  ;;  %v6255_v8 = vld [vmem:[#allocation10 + $0x328] ss:$16 sps:$4 sm:$0xff]  }
 0x44e   : > { %4304 = vmatpush1.bf16.msra.mxu0 %v6189_v10  ;;  %v6258_v10 = vld [vmem:[#allocation10 + $0x28] ss:$16 sps:$4 sm:$0xff]  }
 0x44f   : > { %4305 = vmatprep.subr.bf16.mxu0 %v6197_v11  ;;  %v6266_v11 = vld [vmem:[#allocation10 + $0xc] ss:$16 sps:$4 sm:$0xff]  }
 0x452   : > { %4306 = vmatpush1.bf16.msra.mxu0 %v6195_v13  ;;  %v6264_v13 = vld [vmem:[#allocation10 + $0x8] ss:$16 sps:$4 sm:$0xff]  }
 0x453   : > { %v3284_v21 = vpop.f32.mrf.mxu1  ;;  %4307 = vmatprep.subr.bf16.mxu0 %v6203_v14  ;;  %v6269_v14 = vld [vmem:[#allocation10 + $0x1ec] ss:$16 sps:$4 sm:$0xff]  }
 0x454   : > { %v3285_v26 = vadd.f32 %v3284_v21, %v2878_v6  ;;  %v6252_v6 = vld [vmem:[#allocation10 + $0x48] ss:$16 sps:$4 sm:$0xff]  }
 0x455   : > { %v3286_v23 = vpop.f32.mrf.mxu1  ;;  %v6270_v21 = vld [vmem:[#allocation10 + $0x1c8] ss:$16 sps:$4 sm:$0xff]  }
 0x456   : > { %v3287_v17 = vadd.f32 %v3286_v23, %v2880_v9  ;;  %4308 = vmatpush1.bf16.msra.mxu0 %v6201_v18  ;;  %v3358_v32 = vadd.f32 %v3341_v27, %v3285_v26  ;;  %v6263_v9 = vld [vmem:[#allocation10 + $0x30c] ss:$16 sps:$4 sm:$0xff]   ;;  %v6273_v23 = vld [vmem:[#allocation10 + $0x1a8] ss:$16 sps:$4 sm:$0xff]  }
 0x457   : > { %v3288_v28 = vpop.f32.mrf.mxu1  ;;  %4309 = vmatprep.subr.bf16.mxu0 %v6209_v22  ;;  %v6272_v18 = vld [vmem:[#allocation10 + $0x1cc] ss:$16 sps:$4 sm:$0xff]   ;;  %v6279_v26 = vld [vmem:[#allocation10 + $0x168] ss:$16 sps:$4 sm:$0xff]  }
 0x458   : > { %v3289_v0 = vadd.f32 %v3288_v28, %v2882_v12  ;;  %v3359_v29 = vadd.f32 %v3345_v24, %v3287_v17  ;;  %v3366_v41 = vmax.f32 %v3358_v32, 0.0  ;;  %v6261_v12 = vld [vmem:[#allocation10 + $0x308] ss:$16 sps:$4 sm:$0xff]   ;;  %v6275_v22 = vld [vmem:[#allocation10 + $0x1ac] ss:$16 sps:$4 sm:$0xff]  }
 0x459   : > { %v3290_v36 = vpop.f32.mrf.mxu1  ;;  %v6278_v17 = vld [vmem:[#allocation10 + $0x18c] ss:$16 sps:$4 sm:$0xff]  }
 0x45a   : > { %v3362_v30 = vadd.f32 %v3341_v27, %v3289_v0  ;;  %v3291_v31 = vadd.f32 %v3290_v36, %v2884_v15  ;;  %4310 = vmatpush1.bf16.msra.mxu0 %v6207_v25  ;;  %v3367_v37 = vmax.f32 %v3359_v29, 0.0  ;;  %v6267_v15 = vld [vmem:[#allocation10 + $0x1e8] ss:$16 sps:$4 sm:$0xff]   ;;  %v6281_v25 = vld [vmem:[#allocation10 + $0x16c] ss:$16 sps:$4 sm:$0xff]  }
 0x45b   : > { %4311 = vmatprep.subr.bf16.mxu0 %v6215_v20  ;;  %v6284_v27 = vld [vmem:[#allocation10 + $0x14c] ss:$16 sps:$4 sm:$0xff]   ;;  %v6285_v20 = vld [vmem:[#allocation10 + $0x128] ss:$16 sps:$4 sm:$0xff]  }
 0x45c   : > { %v3363_v16 = vadd.f32 %v3345_v24, %v3291_v31  ;;  %v3370_v35 = vmax.f32 %v3362_v30, 0.0  ;;  %v6276_v24 = vld [vmem:[#allocation10 + $0x188] ss:$16 sps:$4 sm:$0xff]   ;;  %v6287_v28 = vld [vmem:[#allocation10 + $0x12c] ss:$16 sps:$4 sm:$0xff]   ;;  %v6293_v31 = vld [vmem:[#allocation12 + $0x70] sm:$0xff]  }
 0x45d   : > { %v6290_v0 = vld [vmem:[#allocation10 + $0x10c] ss:$16 sps:$4 sm:$0xff]   ;;  %v6288_v36 = vld [vmem:[#allocation10 + $0x108] ss:$16 sps:$4 sm:$0xff]  }
 0x45e   : > { %v3371_v38 = vmax.f32 %v3363_v16, 0.0  ;;  %4312 = vmatpush1.bf16.msra.mxu0 %v6213_v33  ;;  %v6894_v45 = vpack.c.bf16 %v3370_v35, %v3366_v41  ;;  %v6291_v29 = vld [vmem:[#allocation12 + $0x78] sm:$0xff]   ;;  %v6294_v33 = vld [vmem:[#allocation12 + $0x30] sm:$0xff]   ;;  %v6295_v32 = vld [vmem:[#allocation12 + $0x68] sm:$0xff]  }
 0x45f   : > { %4313 = vmatprep.subr.bf16.mxu0 %v6221_v34  ;;  %v6292_v30 = vld [vmem:[#allocation12 + $0x38] sm:$0xff]   ;;  %v6296_v34 = vld [vmem:[#allocation12 + $0x28] sm:$0xff]   ;;  %v6297_v16 = vld [vmem:[#allocation12 + $0x60] sm:$0xff]  }
 0x460   : > { %v3375_v43 = vpack.c.bf16 %v3371_v38, %v3367_v37  ;;  %v6298_v35 = vld [vmem:[#allocation12 + $0x20] sm:$0xff]   ;;  %v6299_v37 = vld [vmem:[#allocation12 + $0x58] sm:$0xff]   ;;  %v6302_v41 = vld [vmem:[#allocation12 + $0x10] sm:$0xff]  }
 0x461   : > { %v6300_v38 = vld [vmem:[#allocation12 + $0x18] sm:$0xff]  }
 0x462   : > { %4200 = vmatprep.mubr.bf16.mxu1 %v3375_v43  ;;  %4314 = vmatpush2.bf16.msra.mxu0 %v6219_v39  ;;  %v6301_v39 = vld [vmem:[#allocation12 + $0x50] sm:$0xff]  }
 0x463   : > { %4201 = vmatmul.mubr.bf16.vlgmr.msra.gmra.mxu1 %v6894_v45  ;;  %4315 = vmatprep.subr.bf16.mxu0 %v6227_v42  ;;  %v6303_v42 = vld [vmem:[#allocation12 + $0x48] sm:$0xff]  }
 0x464   : > { %4255 = vmatpush1.bf16.msra.mxu1 %v6222_v44  ;;  %4286 = vmatprep.mubr.bf16.mxu1 %v3375_v43  ;;  %v6304_v43 = vld [vmem:[#allocation12 + $0x8] sm:$0xff]   ;;  %v6305_v44 = vld [vmem:[#allocation12 + $0x40] sm:$0xff]  }
 0x465   : > { %4256 = vmatprep.subr.bf16.mxu1 %v6230_v46  ;;  %v6307_v46 = vld [vmem:[#allocation12 + $0xf8] sm:$0xff]  }
 0x466   : > { %4316 = vmatpush2.bf16.msra.mxu0 %v6225_v47  ;;  %v6308_v47 = vld [vmem:[#allocation12 + $0xb8] sm:$0xff]  }
 0x467   : > { %4317 = vmatprep.subr.bf16.mxu0 %v6233_v48  ;;  %v6309_v48 = vld [vmem:[#allocation12 + $0xf0] sm:$0xff]  }
 0x468   : > { %4257 = vmatpush1.bf16.msra.mxu1 %v6228_v49  ;;  %v6310_v49 = vld [vmem:[#allocation12 + $0xb0] sm:$0xff]  }
 0x469   : > { %4258 = vmatprep.subr.bf16.mxu1 %v6236_v50  ;;  %v6311_v50 = vld [vmem:[#allocation12 + $0xe8] sm:$0xff]  }
 0x46a   : > { %4318 = vmatpush2.bf16.msra.mxu0 %v6231_v51  ;;  %v6312_v51 = vld [vmem:[#allocation12 + $0xa8] sm:$0xff]  }
 0x46b   : > { %4319 = vmatprep.subr.bf16.mxu0 %v6239_v52  ;;  %v6313_v52 = vld [vmem:[#allocation12 + $0xe0] sm:$0xff]  }
 0x46c   : > { %4259 = vmatpush1.bf16.msra.mxu1 %v6234_v53  ;;  %v6314_v53 = vld [vmem:[#allocation12 + $0xa0] sm:$0xff]  }
 0x46d   : > { %4260 = vmatprep.subr.bf16.mxu1 %v6242_v54  ;;  %v6315_v54 = vld [vmem:[#allocation12 + $0xd8] sm:$0xff]  }
 0x46e   : > { %4320 = vmatpush2.bf16.msra.mxu0 %v6237_v55  ;;  %v6316_v55 = vld [vmem:[#allocation12 + $0x98] sm:$0xff]  }
 0x46f   : > { %4321 = vmatprep.subr.bf16.mxu0 %v6245_v56  ;;  %v6317_v56 = vld [vmem:[#allocation12 + $0xd0] sm:$0xff]  }
 0x470   : > { %4261 = vmatpush1.bf16.msra.mxu1 %v6240_v57  ;;  %v6318_v57 = vld [vmem:[#allocation12 + $0x90] sm:$0xff]  }
 0x471   : > { %4262 = vmatprep.subr.bf16.mxu1 %v6248_v58  ;;  %v6319_v58 = vld [vmem:[#allocation12 + $0xc8] sm:$0xff]  }
 0x472   : > { %4322 = vmatpush2.bf16.msra.mxu0 %v6243_v59  ;;  %v6320_v59 = vld [vmem:[#allocation12 + $0x88] sm:$0xff]  }
 0x473   : > { %4323 = vmatprep.subr.bf16.mxu0 %v6251_v60  ;;  %v6321_v60 = vld [vmem:[#allocation12 + $0xc0] sm:$0xff]  }
 0x474   : > { %4263 = vmatpush1.bf16.msra.mxu1 %v6246_v61  ;;  %v6322_v61 = vld [vmem:[#allocation12 + $0x80] sm:$0xff]  }
 0x475   : > { %4264 = vmatprep.subr.bf16.mxu1 %v6254_v63 }
 0x476   : > { %4324 = vmatpush2.bf16.msra.mxu0 %v6249_v4  ;;  %v3506_v4 = vld [vmem:[%s6931_s14] sm:$0xf] }
 0x477   : > { %4325 = vmatprep.subr.bf16.mxu0 %v6257_v5  ;;  %v3515_v5 = vrot.slane %v3506_v4, %v6812_v3 }
 0x478   : > { %4265 = vmatpush1.bf16.msra.mxu1 %v6252_v6 }
 0x479   : > { %4266 = vmatprep.subr.bf16.mxu1 %v6260_v7  ;;  %v3511_v7 = vrot.slane %v3506_v4, %v6809_v2 }
 0x47a   : > { %4326 = vmatpush2.bf16.msra.mxu0 %v6255_v8 }
 0x47b   : > { %4327 = vmatprep.subr.bf16.mxu0 %v6263_v9 }
 0x47c   : > { %4267 = vmatpush1.bf16.msra.mxu1 %v6258_v10 }
 0x47d   : > { %4268 = vmatprep.subr.bf16.mxu1 %v6266_v11 }
 0x47e   : > { %4328 = vmatpush2.bf16.msra.mxu0 %v6261_v12 }
 0x47f   : > { %5538 = vmatprep.subr.bf16.mxu0 %v6307_v46 }
 0x480   : > { %4269 = vmatpush1.bf16.msra.mxu1 %v6264_v13 }
 0x481   : > { %4330 = vmatmul.mubr.bf16.vlgmr.msra.gmra.mxu0 %v6889_v62  ;;  %4270 = vmatprep.subr.bf16.mxu1 %v6269_v14  ;;  %v6282_v62 = vld [vmem:[#allocation10 + $0x148] ss:$16 sps:$4 sm:$0xff]  }
 0x482   : > { %5539 = vmatpush3.bf16.msra.mxu0 %v6308_v47 }
 0x483   : > { %5540 = vmatprep.subr.bf16.mxu0 %v6309_v48 }
 0x484   : > { %4271 = vmatpush2.bf16.msra.mxu1 %v6267_v15 }
 0x485   : > { %4272 = vmatprep.subr.bf16.mxu1 %v6272_v18 }
 0x486   : > { %5541 = vmatpush3.bf16.msra.mxu0 %v6310_v49 }
 0x487   : > { %5542 = vmatprep.subr.bf16.mxu0 %v6311_v50 }
 0x488   : > { %4273 = vmatpush2.bf16.msra.mxu1 %v6270_v21 }
 0x489   : > { %4274 = vmatprep.subr.bf16.mxu1 %v6275_v22 }
 0x48a   : > { %5543 = vmatpush3.bf16.msra.mxu0 %v6312_v51  ;;  %v5409_v51 = vld [vmem:[%s6933_s16] ss:$0 sm:$0xff] }
 0x48b   : > { %5544 = vmatprep.subr.bf16.mxu0 %v6313_v52 }
 0x48c   : > { %4275 = vmatpush2.bf16.msra.mxu1 %v6273_v23 }
 0x48d   : > { %4276 = vmatprep.subr.bf16.mxu1 %v6278_v17 }
 0x48e   : > { %5545 = vmatpush3.bf16.msra.mxu0 %v6314_v53 }
 0x48f   : > { %5546 = vmatprep.subr.bf16.mxu0 %v6315_v54 }
 0x490   : > { %4277 = vmatpush2.bf16.msra.mxu1 %v6276_v24 }
 0x491   : > { %4278 = vmatprep.subr.bf16.mxu1 %v6281_v25 }
 0x492   : > { %5547 = vmatpush3.bf16.msra.mxu0 %v6316_v55 }
 0x493   : > { %5548 = vmatprep.subr.bf16.mxu0 %v6317_v56 }
 0x494   : > { %4279 = vmatpush2.bf16.msra.mxu1 %v6279_v26 }
 0x495   : > { %4280 = vmatprep.subr.bf16.mxu1 %v6284_v27 }
 0x496   : > { %5549 = vmatpush3.bf16.msra.mxu0 %v6318_v57 }
 0x497   : > { %5550 = vmatprep.subr.bf16.mxu0 %v6319_v58 }
 0x498   : > { %4281 = vmatpush2.bf16.msra.mxu1 %v6282_v62 }
 0x499   : > { %4282 = vmatprep.subr.bf16.mxu1 %v6287_v28 }
 0x49a   : > { %5551 = vmatpush3.bf16.msra.mxu0 %v6320_v59 }
 0x49b   : > { %5552 = vmatprep.subr.bf16.mxu0 %v6321_v60 }
 0x49c   : > { %4283 = vmatpush2.bf16.msra.mxu1 %v6285_v20  ;;  %v3523_v20 = vrot.slane %v3506_v4, %v3352_v40 }
 0x49d   : > { %4284 = vmatprep.subr.bf16.mxu1 %v6290_v0 }
 0x49e   : > { %5553 = vmatpush3.bf16.msra.mxu0 %v6322_v61 }
 0x4a0   : > { %4285 = vmatpush2.bf16.msra.mxu1 %v6288_v36  ;;  %v3519_v36 = vrot.slane %v3506_v4, %v6841_v19 }
 0x4a1   : > { %5516 = vmatprep.subr.bf16.mxu1 %v6291_v29 }
 0x4a3   : > { %4287 = vmatmul.mubr.bf16.vlgmr.msra.gmra.mxu1 %v6894_v45  ;;  %v6306_v45 = vld [vmem:[#allocation12] sm:$0xff]  }
 0x4a4   : > { %5517 = vmatpush3.bf16.msra.mxu1 %v6292_v30 }
 0x4a5   : > { %5518 = vmatprep.subr.bf16.mxu1 %v6293_v31 }
 0x4a8   : > { %5519 = vmatpush3.bf16.msra.mxu1 %v6294_v33 }
 0x4a9   : > { %5520 = vmatprep.subr.bf16.mxu1 %v6295_v32 }
 0x4ac   : > { %5521 = vmatpush3.bf16.msra.mxu1 %v6296_v34 }
 0x4ad   : > { %5522 = vmatprep.subr.bf16.mxu1 %v6297_v16 }
 0x4b0   : > { %5523 = vmatpush3.bf16.msra.mxu1 %v6298_v35 }
 0x4b1   : > { %5524 = vmatprep.subr.bf16.mxu1 %v6299_v37 }
 0x4b4   : > { %5525 = vmatpush3.bf16.msra.mxu1 %v6300_v38 }
 0x4b5   : > { %5526 = vmatprep.subr.bf16.mxu1 %v6301_v39 }
 0x4b8   : > { %5527 = vmatpush3.bf16.msra.mxu1 %v6302_v41 }
 0x4b9   : > { %5528 = vmatprep.subr.bf16.mxu1 %v6303_v42 }
 0x4bc   : > { %5529 = vmatpush3.bf16.msra.mxu1 %v6304_v43 }
 0x4bd   : > { %5530 = vmatprep.subr.bf16.mxu1 %v6305_v44 }
 0x4c0   : > { %5531 = vmatpush3.bf16.msra.mxu1 %v6306_v45 }
 0x501   : > { %v4245_v63 = vpop.f32.mrf.mxu0 }
 0x503   : > { %v4247_v6 = vpop.f32.mrf.mxu0 }
 0x505   : > { %v4249_v11 = vpop.f32.mrf.mxu0 }
 0x507   : > { %v4251_v23 = vpop.f32.mrf.mxu0 }
 0x523   : > { %v4202_v8 = vpop.f32.mrf.mxu1 }
 0x524   : > { %v4203_v12 = vadd.f32 %v4202_v8, %v3511_v7 }
 0x525   : > { %v4204_v9 = vpop.f32.mrf.mxu1 }
 0x526   : > { %v4205_v10 = vadd.f32 %v4204_v9, %v3515_v5  ;;  %v4246_v17 = vadd.f32 %v4245_v63, %v4203_v12 }
 0x527   : > { %v4206_v13 = vpop.f32.mrf.mxu1 }
 0x528   : > { %v4207_v14 = vadd.f32 %v4206_v13, %v3511_v7  ;;  %v4248_v18 = vadd.f32 %v4247_v6, %v4205_v10  ;;  %v4340_v27 = vmax.f32 %v4246_v17, 0.0 }
 0x529   : > { %v4208_v15 = vpop.f32.mrf.mxu1 }
 0x52a   : > { %v4250_v21 = vadd.f32 %v4249_v11, %v4207_v14  ;;  %v4209_v22 = vadd.f32 %v4208_v15, %v3515_v5  ;;  %v4341_v26 = vmax.f32 %v4248_v18, 0.0 }
 0x52c   : > { %v4252_v24 = vadd.f32 %v4251_v23, %v4209_v22  ;;  %v4344_v25 = vmax.f32 %v4250_v21, 0.0 }
 0x52e   : > { %v4345_v3 = vmax.f32 %v4252_v24, 0.0  ;;  %v4348_v2 = vpack.c.bf16 %v4344_v25, %v4340_v27 }
 0x530   : > { %v4349_v62 = vpack.c.bf16 %v4345_v3, %v4341_v26 }
 0x532   : > { %4647 = vmatprep.mubr.bf16.mxu1 %v4349_v62 }
 0x533   : > { %4648 = vmatmul.mubr.bf16.vlgmr.msra.gmra.mxu1 %v4348_v2 }
 0x541   : > { %v4331_v28 = vpop.f32.mrf.mxu0 }
 0x543   : > { %v4333_v0 = vpop.f32.mrf.mxu0 }
 0x545   : > { %v4335_v33 = vpop.f32.mrf.mxu0 }
 0x547   : > { %v4337_v41 = vpop.f32.mrf.mxu0 }
 0x563   : > { %v4288_v29 = vpop.f32.mrf.mxu1 }
 0x564   : > { %v4289_v32 = vadd.f32 %v4288_v29, %v3519_v36 }
 0x565   : > { %v4290_v30 = vpop.f32.mrf.mxu1 }
 0x566   : > { %v4291_v31 = vadd.f32 %v4290_v30, %v3523_v20  ;;  %v4332_v42 = vadd.f32 %v4331_v28, %v4289_v32 }
 0x567   : > { %v4292_v34 = vpop.f32.mrf.mxu1 }
 0x568   : > { %v4293_v16 = vadd.f32 %v4292_v34, %v3519_v36  ;;  %v4334_v37 = vadd.f32 %v4333_v0, %v4291_v31  ;;  %v4342_v45 = vmax.f32 %v4332_v42, 0.0 }
 0x569   : > { %v4294_v35 = vpop.f32.mrf.mxu1 }
 0x56a   : > { %v4336_v38 = vadd.f32 %v4335_v33, %v4293_v16  ;;  %v4295_v39 = vadd.f32 %v4294_v35, %v3523_v20  ;;  %v4343_v1 = vmax.f32 %v4334_v37, 0.0 }
 0x56c   : > { %v4338_v43 = vadd.f32 %v4337_v41, %v4295_v39  ;;  %v4346_v44 = vmax.f32 %v4336_v38, 0.0 }
 0x56e   : > { %v4347_v40 = vmax.f32 %v4338_v43, 0.0  ;;  %v4350_v19 = vpack.c.bf16 %v4346_v44, %v4342_v45 }
 0x570   : > { %v4351_v46 = vpack.c.bf16 %v4347_v40, %v4343_v1 }
 0x572   : > { %4688 = vmatprep.mubr.bf16.mxu0 %v4351_v46 }
 0x573   : > { %4689 = vmatmul.mubr.bf16.vlgmr.msra.gmra.mxu0 %v4350_v19 }
 0x5f3   : > { %v5532_v47 = vpop.f32.mrf.mxu1 }
 0x5f5   : > { %v5533_v48 = vpop.f32.mrf.mxu1 }
 0x5f6   : > { %v5534_v50 = vadd.f32 %v5533_v48, %v5532_v47 }
 0x5f7   : > { %v5535_v49 = vpop.f32.mrf.mxu1 }
 0x5f8   : > { %v4650_v55 = vadd.f32 %v5534_v50, %v5409_v51 }
 0x5f9   : > { %v5536_v52 = vpop.f32.mrf.mxu1 }
 0x5fa   : > { %v5537_v56 = vadd.f32 %v5536_v52, %v5535_v49 }
 0x5fc   : > { %v4653_v61 = vadd.f32 %v5537_v56, %v5409_v51 }
 0x633   : > { %v5554_v53 = vpop.f32.mrf.mxu0 }
 0x635   : > { %v5555_v54 = vpop.f32.mrf.mxu0 }
 0x636   : > { %v5556_v57 = vadd.f32 %v5555_v54, %v5554_v53 }
 0x637   : > { %v5557_v58 = vpop.f32.mrf.mxu0 }
 0x638   : > { %v4691_v59 = vadd.f32 %v5556_v57, %v4650_v55 }
 0x639   : > { %v5558_v60 = vpop.f32.mrf.mxu0 }
 0x63a   : > { %v5559_v63 = vadd.f32 %v5558_v60, %v5557_v58  ;;  %v4697_v4 = vmax.f32 %v4691_v59, 0.0 }
 0x63c   : > { %v4694_v5 = vadd.f32 %v5559_v63, %v4653_v61  ;;  %6323 = vtanh.f32 %v4697_v4 }
 0x63e   : > { %v4698_v6 = vmax.f32 %v4694_v5, 0.0 }
 0x640   : > { %6325 = vtanh.f32 %v4698_v6 }
 0x649   : > { %v6324_v7 = vpop.eup %6323 }
 0x64d   : > { %v6326_v8 = vpop.eup %6325 }
 0x64e   : > { %v5461_v9 = vpack.c.bf16 %v6326_v8, %v6324_v7 }
 0x650   : > { %5462 = vst [vmem:[%s745_s3] sm:$0xff] %v5461_v9  }
 0x651 PF: > { %s34_s0 = sadd.s32 1, %s6531_s0  }
 0x652   : > { %p31_p2 = scmp.ge.s32.totalorder %s34_s0, 4  }
 0x654   :  { %33 = sbr.rel (!%p31_p2) target bundleno = 10 (0xa), region = 174 }
 0x659   :  { %4797 = vsyncpa [#allocation3], 1 }
 0x65a   :  { %4799 = vsyncpa [#allocation3 + $0x1], 1 }
 0x65b   :  { %4800 = vsyncpa [#allocation5], 1 }
 0x65c   :  { %4801 = vsyncpa [#allocation8], 1 }
 0x65d   :  { %4802 = vsyncpa [#allocation11], 1 }

</bundles_post_ra>
